<compile_context>
chip_gen: v7x
topology: tpu7x:2x2x1
jax: 0.10.0
libtpu: 0.0.40
codegen_flags: <defaults>
</compile_context>

<pallas_src>
import functools
import math

import jax
import jax.numpy as jnp
from jax.experimental import pallas as pl
from jax.experimental.pallas import tpu as pltpu


_VMEM_LIMIT = 32 * 1024 * 1024  # safe on v5e/v6e (128 MiB) and v7x (64 MiB) chips

_DN_LAST = (((1,), (1,)), ((), ()))  # contract last dim of both operands (x @ W^T)


def _sub_tile(dim, pref):
    """Second-minor block dim: preferred multiple of 8 that divides dim, else full."""
    if pref % 8 == 0 and dim % pref == 0:
        return pref
    return dim


def _lane_tile(dim, pref):
    """Minor (lane) block dim: preferred multiple of 128 that divides dim, else full."""
    if pref % 128 == 0 and dim % pref == 0:
        return pref
    return dim


# -----------------------------------------------------------------------------
# Pallas kernels
# -----------------------------------------------------------------------------
def _norm_matmul_kernel(x_ref, wn_ref, w_ref, b_ref, o_ref, *, eps):
    # Fused RMSNorm + linear.  blocks: x (tm,H) f32, wn (1,H) f32,
    # w (tn,H) bf16, b (1,tn) f32, o (tm,tn) bf16.
    x = x_ref[...]
    ms = jnp.mean(x * x, axis=-1, keepdims=True)          # cheap VPU/XLU, hides under MXU
    xn = (x * jax.lax.rsqrt(ms + eps) * (1.0 + wn_ref[...])).astype(jnp.bfloat16)
    y = jax.lax.dot_general(xn, w_ref[...], _DN_LAST,
                            preferred_element_type=jnp.float32)
    o_ref[...] = (y + b_ref[...]).astype(o_ref.dtype)


def _norm_gateup_kernel(x_ref, wn_ref, wg_ref, bg_ref, wu_ref, bu_ref, h_ref, *, eps):
    # Fused RMSNorm + gate_proj + up_proj + sigmoid/gelu-tanh epilogue (f32 epilogue).
    x = x_ref[...]
    ms = jnp.mean(x * x, axis=-1, keepdims=True)
    xn = (x * jax.lax.rsqrt(ms + eps) * (1.0 + wn_ref[...])).astype(jnp.bfloat16)
    g = jax.lax.dot_general(xn, wg_ref[...], _DN_LAST,
                            preferred_element_type=jnp.float32) + bg_ref[...]
    u = jax.lax.dot_general(xn, wu_ref[...], _DN_LAST,
                            preferred_element_type=jnp.float32) + bu_ref[...]
    g = jax.nn.sigmoid(g)
    c = 0.7978845608028654  # sqrt(2/pi)
    u = 0.5 * u * (1.0 + jnp.tanh(c * (u + 0.044715 * u * u * u)))  # gelu(tanh)
    h_ref[...] = (g * u).astype(h_ref.dtype)


def _down_residual_kernel(h_ref, wd_ref, bd_ref, res_ref, o_ref, acc_ref):
    # down_proj with K-tiling + f32 accumulator; residual + bias fused at finalize.
    k = pl.program_id(2)

    @pl.when(k == 0)
    def _():
        acc_ref[...] = jnp.zeros_like(acc_ref)

    acc_ref[...] += jax.lax.dot_general(h_ref[...], wd_ref[...], _DN_LAST,
                                        preferred_element_type=jnp.float32)

    @pl.when(k == pl.num_programs(2) - 1)
    def _():
        o_ref[...] = res_ref[...] + acc_ref[...] + bd_ref[...]


def _oproj_residual_kernel(attn_ref, w_ref, b_ref, res_ref, o_ref, acc_ref):
    # o-projection accumulated over heads (grid axis 2), residual fused.
    # blocks: attn (1,1,S,D) bf16, w (1,tn,D) bf16, b (1,tn), res/o (1,S,tn) f32.
    h = pl.program_id(2)

    @pl.when(h == 0)
    def _():
        acc_ref[...] = jnp.zeros_like(acc_ref)

    a = attn_ref[0, 0]                    # (S, D)
    w = w_ref[0]                          # (tn, D)
    acc_ref[...] += jax.lax.dot_general(a, w, _DN_LAST,
                                        preferred_element_type=jnp.float32)

    @pl.when(h == pl.num_programs(2) - 1)
    def _():
        o_ref[0] = res_ref[0] + acc_ref[...] + b_ref[...]


def _attention_kernel(q_ref, kn_ref, vn_ref, kc_ref, vc_ref, mc_ref, mn_ref, o_ref,
                      *, scale):
    # One batch per grid step, all heads at once.  Past cache and new K/V are
    # separate inputs (no concatenated cache is ever materialized); a joint
    # max/sum softmax over both pieces gives the exact result.
    q = q_ref[0]                          # (nH, S, D) bf16
    kn = kn_ref[0]
    vn = vn_ref[0]
    kc = kc_ref[0]                        # (nH, P, D) bf16
    vc = vc_ref[0]
    mc = mc_ref[0]                        # (1, S, P) f32 additive mask (cache part)
    mn = mn_ref[0]                        # (1, S, S) f32 additive mask (new part)

    s_c = jnp.einsum("nqd,npd->nqp", q, kc,
                     preferred_element_type=jnp.float32) * scale + mc
    s_n = jnp.einsum("nqd,nkd->nqk", q, kn,
                     preferred_element_type=jnp.float32) * scale + mn

    m = jnp.maximum(jnp.max(s_c, axis=-1, keepdims=True),
                    jnp.max(s_n, axis=-1, keepdims=True))
    p_c = jnp.exp(s_c - m)
    p_n = jnp.exp(s_n - m)
    l = jnp.sum(p_c, axis=-1, keepdims=True) + jnp.sum(p_n, axis=-1, keepdims=True)

    acc = jnp.einsum("nqp,npd->nqd", p_c.astype(vc.dtype), vc,
                     preferred_element_type=jnp.float32)
    acc = acc + jnp.einsum("nqk,nkd->nqd", p_n.astype(vn.dtype), vn,
                           preferred_element_type=jnp.float32)
    o_ref[0] = (acc * pl.reciprocal(l, approx=True)).astype(o_ref.dtype)


# -----------------------------------------------------------------------------
# pallas_call wrappers
# -----------------------------------------------------------------------------
def fused_norm_linear(x2d, w_norm, w, b, *, eps, tm=256, tn=256):
    m, h = x2d.shape
    n = w.shape[0]
    tm = _sub_tile(m, tm)
    tn = _lane_tile(n, tn)
    grid = (m // tm, n // tn)
    return pl.pallas_call(
        functools.partial(_norm_matmul_kernel, eps=eps),
        out_shape=jax.ShapeDtypeStruct((m, n), jnp.bfloat16),
        grid=grid,
        in_specs=[
            pl.BlockSpec((tm, h), lambda i, j: (i, 0)),
            pl.BlockSpec((1, h), lambda i, j: (0, 0)),
            pl.BlockSpec((tn, h), lambda i, j: (j, 0)),
            pl.BlockSpec((1, tn), lambda i, j: (0, j)),
        ],
        out_specs=pl.BlockSpec((tm, tn), lambda i, j: (i, j)),
        compiler_params=pltpu.CompilerParams(
            dimension_semantics=("parallel", "parallel"),
            vmem_limit_bytes=_VMEM_LIMIT),
        cost_estimate=pl.CostEstimate(
            flops=2 * m * n * h, transcendentals=0,
            bytes_accessed=x2d.size * 4 + w.size * 2 + n * 4 + m * n * 2),
    )(x2d, w_norm.reshape(1, h), w, b.reshape(1, n))


def fused_norm_gateup(x2d, w_norm, wg, bg, wu, bu, *, eps, tm=256, tn=256):
    m, h = x2d.shape
    n = wg.shape[0]
    tm = _sub_tile(m, tm)
    tn = _lane_tile(n, tn)
    grid = (m // tm, n // tn)
    return pl.pallas_call(
        functools.partial(_norm_gateup_kernel, eps=eps),
        out_shape=jax.ShapeDtypeStruct((m, n), jnp.bfloat16),
        grid=grid,
        in_specs=[
            pl.BlockSpec((tm, h), lambda i, j: (i, 0)),
            pl.BlockSpec((1, h), lambda i, j: (0, 0)),
            pl.BlockSpec((tn, h), lambda i, j: (j, 0)),
            pl.BlockSpec((1, tn), lambda i, j: (0, j)),
            pl.BlockSpec((tn, h), lambda i, j: (j, 0)),
            pl.BlockSpec((1, tn), lambda i, j: (0, j)),
        ],
        out_specs=pl.BlockSpec((tm, tn), lambda i, j: (i, j)),
        compiler_params=pltpu.CompilerParams(
            dimension_semantics=("parallel", "parallel"),
            vmem_limit_bytes=_VMEM_LIMIT),
        cost_estimate=pl.CostEstimate(
            flops=4 * m * n * h, transcendentals=2 * m * n,
            bytes_accessed=x2d.size * 4 + 2 * wg.size * 2 + 2 * n * 4 + m * n * 2),
    )(x2d, w_norm.reshape(1, h), wg, bg.reshape(1, n), wu, bu.reshape(1, n))


def down_proj_residual(h2d, wd, bd, res2d, *, tm=256, tn=256, tk=512):
    m, i = h2d.shape
    n = wd.shape[0]
    tm = _sub_tile(m, tm)
    tn = _lane_tile(n, tn)
    tk = _lane_tile(i, tk)
    grid = (m // tm, n // tn, i // tk)
    return pl.pallas_call(
        _down_residual_kernel,
        out_shape=jax.ShapeDtypeStruct((m, n), jnp.float32),
        grid=grid,
        in_specs=[
            pl.BlockSpec((tm, tk), lambda im, jn, kk: (im, kk)),
            pl.BlockSpec((tn, tk), lambda im, jn, kk: (jn, kk)),
            pl.BlockSpec((1, tn), lambda im, jn, kk: (0, jn)),
            pl.BlockSpec((tm, tn), lambda im, jn, kk: (im, jn)),
        ],
        out_specs=pl.BlockSpec((tm, tn), lambda im, jn, kk: (im, jn)),
        scratch_shapes=[pltpu.VMEM((tm, tn), jnp.float32)],
        compiler_params=pltpu.CompilerParams(
            dimension_semantics=("parallel", "parallel", "arbitrary"),
            vmem_limit_bytes=_VMEM_LIMIT),
        cost_estimate=pl.CostEstimate(
            flops=2 * m * n * i, transcendentals=0,
            bytes_accessed=h2d.size * 2 + wd.size * 2 + (2 * m * n + n) * 4),
    )(h2d, wd, bd.reshape(1, n), res2d)


def o_proj_residual(attn, wo_r, bo, residual, *, tn=256):
    # attn: (B, nH, S, D) bf16 ; wo_r: (nH, H, D) bf16 ; residual: (B, S, H) f32
    B, nH, S, D = attn.shape
    H = wo_r.shape[1]
    tn = _lane_tile(H, tn)
    grid = (B, H // tn, nH)
    return pl.pallas_call(
        _oproj_residual_kernel,
        out_shape=jax.ShapeDtypeStruct((B, S, H), jnp.float32),
        grid=grid,
        in_specs=[
            pl.BlockSpec((1, 1, S, D), lambda b, j, h: (b, h, 0, 0)),
            pl.BlockSpec((1, tn, D), lambda b, j, h: (h, j, 0)),
            pl.BlockSpec((1, tn), lambda b, j, h: (0, j)),
            pl.BlockSpec((1, S, tn), lambda b, j, h: (b, 0, j)),
        ],
        out_specs=pl.BlockSpec((1, S, tn), lambda b, j, h: (b, 0, j)),
        scratch_shapes=[pltpu.VMEM((S, tn), jnp.float32)],
        compiler_params=pltpu.CompilerParams(
            dimension_semantics=("parallel", "parallel", "arbitrary"),
            vmem_limit_bytes=_VMEM_LIMIT),
        cost_estimate=pl.CostEstimate(
            flops=2 * B * S * H * nH * D, transcendentals=0,
            bytes_accessed=attn.size * 2 + wo_r.size * 2 + (2 * B * S * H + H) * 4),
    )(attn, wo_r, bo.reshape(1, H), residual)


def attention_core(q, k_new, v_new, k_cache, v_cache, mask_cache, mask_new):
    # q/k_new/v_new: (B, nH, S, D) bf16 ; k_cache/v_cache: (B, nH, P, D) bf16
    B, nH, S, D = q.shape
    P = k_cache.shape[2]
    scale = 1.0 / math.sqrt(D)
    return pl.pallas_call(
        functools.partial(_attention_kernel, scale=scale),
        out_shape=jax.ShapeDtypeStruct((B, nH, S, D), jnp.bfloat16),
        grid=(B,),
        in_specs=[
            pl.BlockSpec((1, nH, S, D), lambda b: (b, 0, 0, 0)),
            pl.BlockSpec((1, nH, S, D), lambda b: (b, 0, 0, 0)),
            pl.BlockSpec((1, nH, S, D), lambda b: (b, 0, 0, 0)),
            pl.BlockSpec((1, nH, P, D), lambda b: (b, 0, 0, 0)),
            pl.BlockSpec((1, nH, P, D), lambda b: (b, 0, 0, 0)),
            pl.BlockSpec((1, 1, S, P), lambda b: (b, 0, 0, 0)),
            pl.BlockSpec((1, 1, S, S), lambda b: (b, 0, 0, 0)),
        ],
        out_specs=pl.BlockSpec((1, nH, S, D), lambda b: (b, 0, 0, 0)),
        compiler_params=pltpu.CompilerParams(
            dimension_semantics=("parallel",),
            vmem_limit_bytes=_VMEM_LIMIT),
    )(q, k_new, v_new, k_cache, v_cache, mask_cache, mask_new)
    # TODO(synk): for very long caches, tile the P axis flash-style (online softmax
    # with m/l/acc scratch) instead of a single (P,D) block per batch.


# -----------------------------------------------------------------------------
# RoPE (cheap elementwise glue on the *new* tokens only, plain JAX)
# -----------------------------------------------------------------------------
def apply_rope(x, pos_ids, base=10000.0):
    # x: (B, nH, S, D) f32, pos_ids: (B, S)
    B, nH, S, D = x.shape
    inv_freq = 1.0 / (base ** (jnp.arange(0, D, 2, dtype=jnp.float32) / D))
    ang = pos_ids[:, :, None].astype(jnp.float32) * inv_freq[None, None, :]
    cos = jnp.concatenate([jnp.cos(ang), jnp.cos(ang)], axis=-1)[:, None]   # (B,1,S,D)
    sin = jnp.concatenate([jnp.sin(ang), jnp.sin(ang)], axis=-1)[:, None]
    x1, x2 = x[..., : D // 2], x[..., D // 2:]
    rot = jnp.concatenate([-x2, x1], axis=-1)
    return x * cos + rot * sin


# -----------------------------------------------------------------------------
# Full DecoderLayer forward
# -----------------------------------------------------------------------------
def decoder_layer_forward(params, x, attn_mask, pos_ids, kv_cache, *,
                          num_heads, eps, tm=256, tn=256, tk=512):
    B, S, H = x.shape
    D = H // num_heads
    k_cache, v_cache = kv_cache                       # (B, nH, P, D) bf16
    P = k_cache.shape[2]

    x2d = x.reshape(B * S, H)

    # --- fused pre-RMSNorm + QKV projection (single wide MXU panel) -----------
    qkv = fused_norm_linear(x2d, params["weight_pre"], params["wqkv"],
                            params["bqkv"], eps=eps, tm=tm, tn=tn)   # (B*S, 3H) bf16
    qkv = qkv.reshape(B, S, 3, num_heads, D)
    # relayout only the *new* tokens to (B, nH, S, D); the cache is untouched
    q = jnp.transpose(qkv[:, :, 0], (0, 2, 1, 3))
    k = jnp.transpose(qkv[:, :, 1], (0, 2, 1, 3))
    v = jnp.transpose(qkv[:, :, 2], (0, 2, 1, 3))

    q = apply_rope(q.astype(jnp.float32), pos_ids).astype(jnp.bfloat16)
    k = apply_rope(k.astype(jnp.float32), pos_ids).astype(jnp.bfloat16)

    # --- attention: cache and new K/V read separately (no HBM cache concat) ---
    mask_c = attn_mask[..., :P]
    mask_n = attn_mask[..., P:]
    attn = attention_core(q, k, v, k_cache, v_cache, mask_c, mask_n)  # (B,nH,S,D)
    # TODO(synk): write k/v back into a preallocated KV cache in place
    # (input_output_aliases / dynamic_update_slice) for multi-step decode.

    # --- o-projection accumulated over heads + first residual (fused) ---------
    x = o_proj_residual(attn, params["wo_r"], params["bo"], x, tn=tn)  # (B,S,H) f32

    # --- fused post-RMSNorm + gate/up + activations, then down-proj + residual -
    x2d = x.reshape(B * S, H)
    h = fused_norm_gateup(x2d, params["weight_post"],
                          params["wg"], params["bg"],
                          params["wu"], params["bu"],
                          eps=eps, tm=tm, tn=tn)                       # (B*S, I) bf16
    out = down_proj_residual(h, params["wd"], params["bd"], x2d,
                             tm=tm, tn=tn, tk=tk)                      # (B*S, H) f32
    return out.reshape(B, S, H)


# -----------------------------------------------------------------------------
# Parameters (PyTorch-layout), then a one-time kernel-friendly transform
# -----------------------------------------------------------------------------
def make_params(key, hidden, intermediate):
    ks = jax.random.split(key, 16)
    n = lambda k, shape: (0.02 * jax.random.normal(k, shape)).astype(jnp.float32)
    return {
        "weight_pre": jnp.zeros((hidden,), jnp.float32),    # torch.zeros init
        "weight_post": jnp.zeros((hidden,), jnp.float32),   # torch.zeros init
        "wq": n(ks[0], (hidden, hidden)), "bq": n(ks[1], (hidden,)),
        "wk": n(ks[2], (hidden, hidden)), "bk": n(ks[3], (hidden,)),
        "wv": n(ks[4], (hidden, hidden)), "bv": n(ks[5], (hidden,)),
        "wo": n(ks[6], (hidden, hidden)), "bo": n(ks[7], (hidden,)),
        "wg": n(ks[8], (intermediate, hidden)), "bg": n(ks[9], (intermediate,)),
        "wu": n(ks[10], (intermediate, hidden)), "bu": n(ks[11], (intermediate,)),
        "wd": n(ks[12], (hidden, intermediate)), "bd": n(ks[13], (hidden,)),
    }


def prepare_params(p, num_heads):
    """One-time weight transform: QKV concat, bf16 cast, head-major Wo."""
    H = p["wq"].shape[0]
    D = H // num_heads
    return {
        "weight_pre": p["weight_pre"],
        "weight_post": p["weight_post"],
        "wqkv": jnp.concatenate([p["wq"], p["wk"], p["wv"]], axis=0).astype(jnp.bfloat16),
        "bqkv": jnp.concatenate([p["bq"], p["bk"], p["bv"]], axis=0),
        # Wo (H_out, H_in=nH*D) -> (nH, H_out, D) so the o-proj kernel can
        # accumulate per head directly from the (B,nH,S,D) attention output.
        "wo_r": p["wo"].reshape(H, num_heads, D).transpose(1, 0, 2).astype(jnp.bfloat16),
        "bo": p["bo"],
        "wg": p["wg"].astype(jnp.bfloat16), "bg": p["bg"],
        "wu": p["wu"].astype(jnp.bfloat16), "bu": p["bu"],
        "wd": p["wd"].astype(jnp.bfloat16), "bd": p["bd"],
    }


if __name__ == "__main__":
    B, S, H = 2, 8, 32
    NH, D = 4, 8
    I = 64
    P = 4                     # past KV-cache length
    EPS = 1e-6

    key = jax.random.PRNGKey(0)
    k_x, k_kc, k_vc, k_p = jax.random.split(key, 4)

    x = jax.random.normal(k_x, (B, S, H), jnp.float32)
    k_cache = jax.random.normal(k_kc, (B, NH, P, D), jnp.float32).astype(jnp.bfloat16)
    v_cache = jax.random.normal(k_vc, (B, NH, P, D), jnp.float32).astype(jnp.bfloat16)
    pos_ids = jnp.broadcast_to(P + jnp.arange(S, dtype=jnp.int32), (B, S))

    # additive causal mask over total length T = P + S: query i (global P+i)
    # may attend to positions <= P+i.
    T = P + S
    q_pos = (P + jnp.arange(S))[:, None]
    k_pos = jnp.arange(T)[None, :]
    causal = (k_pos <= q_pos)
    attn_mask = jnp.where(causal, 0.0, -1e9).astype(jnp.float32)
    attn_mask = jnp.broadcast_to(attn_mask[None, None], (B, 1, S, T))

    params = prepare_params(make_params(k_p, H, I), NH)

    # Small tm so the demo actually exercises multi-step grids (M tiling and the
    # per-head K accumulation in the o-proj kernel); tn/tk fall back to full
    # dims at these tiny shapes but become 256/512 panels at production sizes.
    fwd = jax.jit(functools.partial(decoder_layer_forward,
                                    num_heads=NH, eps=EPS, tm=8, tn=256, tk=512))
    out = fwd(params, x, attn_mask, pos_ids, (k_cache, v_cache))
    jax.block_until_ready(out)
    assert out.shape == (B, S, H)
    assert bool(jnp.isfinite(out).all())
    print("KERNEL_OK")
</pallas_src>

<mosaic_0001>
module attributes {stable_mosaic.version = 11 : i64} {
  func.func @_norm_matmul_kernel(%arg0: i32, %arg1: i32, %arg2: memref<8x32xf32, #tpu.memory_space<vmem>>, %arg3: memref<1x32xf32, #tpu.memory_space<vmem>>, %arg4: memref<96x32xbf16, #tpu.memory_space<vmem>>, %arg5: memref<1x96xf32, #tpu.memory_space<vmem>>, %arg6: memref<8x96xbf16, #tpu.memory_space<vmem>>) attributes {dimension_semantics = [#tpu.dimension_semantics<parallel>, #tpu.dimension_semantics<parallel>], iteration_bounds = array<i64: 2, 1>, scalar_prefetch = 0 : i64, scratch_operands = 0 : i64, tpu.core_type = #tpu.core_type<tc>, window_params = [{transform_indices = @transform_0, window_bounds = array<i64: 8, 32>}, {pipeline_mode = #tpu.pipeline_mode<synchronous>, transform_indices = @transform_1, window_bounds = array<i64: 1, 32>}, {transform_indices = @transform_2, window_bounds = array<i64: 96, 32>}, {transform_indices = @transform_3, window_bounds = array<i64: 1, 96>}, {transform_indices = @transform_4, window_bounds = array<i64: 8, 96>}]} {
    %c0 = arith.constant 0 : index
    %c0_0 = arith.constant 0 : index
    %0 = vector.load %arg2[%c0, %c0_0] : memref<8x32xf32, #tpu.memory_space<vmem>>, vector<8x32xf32>
    %1 = arith.mulf %0, %0 : vector<8x32xf32>
    %cst = arith.constant dense<0.000000e+00> : vector<8xf32>
    %2 = vector.multi_reduction <add>, %1, %cst [1] : vector<8x32xf32> to vector<8xf32>
    %3 = vector.shape_cast %2 : vector<8xf32> to vector<8x1xf32>
    %cst_1 = arith.constant 3.200000e+01 : f32
    %4 = vector.broadcast %cst_1 : f32 to vector<8x1xf32>
    %5 = arith.divf %3, %4 : vector<8x1xf32>
    %cst_2 = arith.constant 9.99999997E-7 : f32
    %6 = vector.broadcast %cst_2 : f32 to vector<8x1xf32>
    %7 = arith.addf %5, %6 : vector<8x1xf32>
    %8 = math.rsqrt %7 : vector<8x1xf32>
    %9 = vector.broadcast %8 : vector<8x1xf32> to vector<8x32xf32>
    %10 = arith.mulf %0, %9 : vector<8x32xf32>
    %c0_3 = arith.constant 0 : index
    %c0_4 = arith.constant 0 : index
    %11 = vector.load %arg3[%c0_3, %c0_4] : memref<1x32xf32, #tpu.memory_space<vmem>>, vector<1x32xf32>
    %cst_5 = arith.constant 1.000000e+00 : f32
    %12 = vector.broadcast %cst_5 : f32 to vector<1x32xf32>
    %13 = arith.addf %12, %11 : vector<1x32xf32>
    %14 = vector.broadcast %13 : vector<1x32xf32> to vector<8x32xf32>
    %15 = arith.mulf %10, %14 : vector<8x32xf32>
    %16 = arith.truncf %15 : vector<8x32xf32> to vector<8x32xbf16>
    %c0_6 = arith.constant 0 : index
    %c0_7 = arith.constant 0 : index
    %17 = vector.load %arg4[%c0_6, %c0_7] : memref<96x32xbf16, #tpu.memory_space<vmem>>, vector<96x32xbf16>
    %cst_8 = arith.constant dense<0.000000e+00> : vector<8x96xf32>
    %18 = tpu.matmul %16, %17, %cst_8 {dimension_numbers = #tpu.dot_dimension_numbers<[1], [1], [0], [0], [0, 0, 1, 0], [], []>} : vector<8x32xbf16>, vector<96x32xbf16>, vector<8x96xf32> -> vector<8x96xf32>
    %c0_9 = arith.constant 0 : index
    %c0_10 = arith.constant 0 : index
    %19 = vector.load %arg5[%c0_9, %c0_10] : memref<1x96xf32, #tpu.memory_space<vmem>>, vector<1x96xf32>
    %20 = vector.broadcast %19 : vector<1x96xf32> to vector<8x96xf32>
    %21 = arith.addf %18, %20 : vector<8x96xf32>
    %22 = arith.truncf %21 : vector<8x96xf32> to vector<8x96xbf16>
    %c0_11 = arith.constant 0 : index
    %c0_12 = arith.constant 0 : index
    %23 = vector.load %arg6[%c0_11, %c0_12] : memref<8x96xbf16, #tpu.memory_space<vmem>>, vector<8x96xbf16>
    tpu.vector_store %arg6[%c0_11, %c0_12], %22 {strides = array<i32>} : memref<8x96xbf16, #tpu.memory_space<vmem>>, vector<8x96xbf16>,
    return
  }
  func.func @transform_0(%arg0: i32, %arg1: i32) -> (i32, i32) {
    %c0_i32 = arith.constant 0 : i32
    %c0_i32_0 = arith.constant 0 : i32
    return %arg0, %c0_i32 : i32, i32
  }
  func.func @transform_1(%arg0: i32, %arg1: i32) -> (i32, i32) {
    %c0_i32 = arith.constant 0 : i32
    %c0_i32_0 = arith.constant 0 : i32
    %c0_i32_1 = arith.constant 0 : i32
    return %c0_i32, %c0_i32_0 : i32, i32
  }
  func.func @transform_2(%arg0: i32, %arg1: i32) -> (i32, i32) {
    %c0_i32 = arith.constant 0 : i32
    %c0_i32_0 = arith.constant 0 : i32
    return %arg1, %c0_i32 : i32, i32
  }
  func.func @transform_3(%arg0: i32, %arg1: i32) -> (i32, i32) {
    %c0_i32 = arith.constant 0 : i32
    %c0_i32_0 = arith.constant 0 : i32
    return %c0_i32, %arg1 : i32, i32
  }
  func.func @transform_4(%arg0: i32, %arg1: i32) -> (i32, i32) {
    %c0_i32 = arith.constant 0 : i32
    return %arg0, %arg1 : i32, i32
  }
}

module attributes {stable_mosaic.version = 11 : i64} {
  func.func @_attention_kernel(%arg0: i32, %arg1: memref<1x4x8x8xbf16, #tpu.memory_space<vmem>>, %arg2: memref<1x4x8x8xbf16, #tpu.memory_space<vmem>>, %arg3: memref<1x4x8x8xbf16, #tpu.memory_space<vmem>>, %arg4: memref<1x4x4x8xbf16, #tpu.memory_space<vmem>>, %arg5: memref<1x4x4x8xbf16, #tpu.memory_space<vmem>>, %arg6: memref<1x1x8x4xf32, #tpu.memory_space<vmem>>, %arg7: memref<1x1x8x8xf32, #tpu.memory_space<vmem>>, %arg8: memref<1x4x8x8xbf16, #tpu.memory_space<vmem>>) attributes {dimension_semantics = [#tpu.dimension_semantics<parallel>], iteration_bounds = array<i64: 2>, scalar_prefetch = 0 : i64, scratch_operands = 0 : i64, tpu.core_type = #tpu.core_type<tc>, window_params = [{transform_indices = @transform_0, window_bounds = array<i64: 1, 4, 8, 8>}, {transform_indices = @transform_1, window_bounds = array<i64: 1, 4, 8, 8>}, {transform_indices = @transform_2, window_bounds = array<i64: 1, 4, 8, 8>}, {transform_indices = @transform_3, window_bounds = array<i64: 1, 4, 4, 8>}, {transform_indices = @transform_4, window_bounds = array<i64: 1, 4, 4, 8>}, {transform_indices = @transform_5, window_bounds = array<i64: 1, 1, 8, 4>}, {transform_indices = @transform_6, window_bounds = array<i64: 1, 1, 8, 8>}, {transform_indices = @transform_7, window_bounds = array<i64: 1, 4, 8, 8>}]} {
    %c0 = arith.constant 0 : index
    %c0_0 = arith.constant 0 : index
    %c0_1 = arith.constant 0 : index
    %c0_2 = arith.constant 0 : index
    %0 = vector.load %arg1[%c0, %c0_0, %c0_1, %c0_2] : memref<1x4x8x8xbf16, #tpu.memory_space<vmem>>, vector<1x4x8x8xbf16>
    %1 = vector.shape_cast %0 : vector<1x4x8x8xbf16> to vector<4x8x8xbf16>
    %c0_3 = arith.constant 0 : index
    %c0_4 = arith.constant 0 : index
    %c0_5 = arith.constant 0 : index
    %c0_6 = arith.constant 0 : index
    %2 = vector.load %arg2[%c0_3, %c0_4, %c0_5, %c0_6] : memref<1x4x8x8xbf16, #tpu.memory_space<vmem>>, vector<1x4x8x8xbf16>
    %3 = vector.shape_cast %2 : vector<1x4x8x8xbf16> to vector<4x8x8xbf16>
    %c0_7 = arith.constant 0 : index
    %c0_8 = arith.constant 0 : index
    %c0_9 = arith.constant 0 : index
    %c0_10 = arith.constant 0 : index
    %4 = vector.load %arg3[%c0_7, %c0_8, %c0_9, %c0_10] : memref<1x4x8x8xbf16, #tpu.memory_space<vmem>>, vector<1x4x8x8xbf16>
    %5 = vector.shape_cast %4 : vector<1x4x8x8xbf16> to vector<4x8x8xbf16>
    %c0_11 = arith.constant 0 : index
    %c0_12 = arith.constant 0 : index
    %c0_13 = arith.constant 0 : index
    %c0_14 = arith.constant 0 : index
    %6 = vector.load %arg4[%c0_11, %c0_12, %c0_13, %c0_14] : memref<1x4x4x8xbf16, #tpu.memory_space<vmem>>, vector<1x4x4x8xbf16>
    %7 = vector.shape_cast %6 : vector<1x4x4x8xbf16> to vector<4x4x8xbf16>
    %c0_15 = arith.constant 0 : index
    %c0_16 = arith.constant 0 : index
    %c0_17 = arith.constant 0 : index
    %c0_18 = arith.constant 0 : index
    %8 = vector.load %arg5[%c0_15, %c0_16, %c0_17, %c0_18] : memref<1x4x4x8xbf16, #tpu.memory_space<vmem>>, vector<1x4x4x8xbf16>
    %9 = vector.shape_cast %8 : vector<1x4x4x8xbf16> to vector<4x4x8xbf16>
    %c0_19 = arith.constant 0 : index
    %c0_20 = arith.constant 0 : index
    %c0_21 = arith.constant 0 : index
    %c0_22 = arith.constant 0 : index
    %10 = vector.load %arg6[%c0_19, %c0_20, %c0_21, %c0_22] : memref<1x1x8x4xf32, #tpu.memory_space<vmem>>, vector<1x1x8x4xf32>
    %11 = vector.shape_cast %10 : vector<1x1x8x4xf32> to vector<1x8x4xf32>
    %c0_23 = arith.constant 0 : index
    %c0_24 = arith.constant 0 : index
    %c0_25 = arith.constant 0 : index
    %c0_26 = arith.constant 0 : index
    %12 = vector.load %arg7[%c0_23, %c0_24, %c0_25, %c0_26] : memref<1x1x8x8xf32, #tpu.memory_space<vmem>>, vector<1x1x8x8xf32>
    %13 = vector.shape_cast %12 : vector<1x1x8x8xf32> to vector<1x8x8xf32>
    "tpu.trace_start"() <{level = 10 : i32, message = "nqd,npd->nqp"}> : () -> ()
    %cst = arith.constant dense<0.000000e+00> : vector<4x8x4xf32>
    %14 = tpu.matmul %1, %7, %cst {dimension_numbers = #tpu.dot_dimension_numbers<[2], [2], [1], [1], [0, 0, 0, 1, 1, 1], [0], [0]>} : vector<4x8x8xbf16>, vector<4x4x8xbf16>, vector<4x8x4xf32> -> vector<4x8x4xf32>
    "tpu.trace_stop"() : () -> ()
    %cst_27 = arith.constant 0.353553385 : f32
    %15 = vector.broadcast %cst_27 : f32 to vector<4x8x4xf32>
    %16 = arith.mulf %14, %15 : vector<4x8x4xf32>
    %17 = vector.broadcast %11 : vector<1x8x4xf32> to vector<4x8x4xf32>
    %18 = arith.addf %16, %17 : vector<4x8x4xf32>
    "tpu.trace_start"() <{level = 10 : i32, message = "nqd,nkd->nqk"}> : () -> ()
    %cst_28 = arith.constant dense<0.000000e+00> : vector<4x8x8xf32>
    %19 = tpu.matmul %1, %3, %cst_28 {dimension_numbers = #tpu.dot_dimension_numbers<[2], [2], [1], [1], [0, 0, 0, 1, 1, 1], [0], [0]>} : vector<4x8x8xbf16>, vector<4x8x8xbf16>, vector<4x8x8xf32> -> vector<4x8x8xf32>
    "tpu.trace_stop"() : () -> ()
    %cst_29 = arith.constant 0.353553385 : f32
    %20 = vector.broadcast %cst_29 : f32 to vector<4x8x8xf32>
    %21 = arith.mulf %19, %20 : vector<4x8x8xf32>
    %22 = vector.broadcast %13 : vector<1x8x8xf32> to vector<4x8x8xf32>
    %23 = arith.addf %21, %22 : vector<4x8x8xf32>
    %cst_30 = arith.constant dense<0xFF800000> : vector<4x8xf32>
    %24 = vector.multi_reduction <maximumf>, %18, %cst_30 [2] : vector<4x8x4xf32> to vector<4x8xf32>
    %25 = vector.shape_cast %24 : vector<4x8xf32> to vector<4x8x1xf32>
    %cst_31 = arith.constant dense<0xFF800000> : vector<4x8xf32>
    %26 = vector.multi_reduction <maximumf>, %23, %cst_31 [2] : vector<4x8x8xf32> to vector<4x8xf32>
    %27 = vector.shape_cast %26 : vector<4x8xf32> to vector<4x8x1xf32>
    %28 = arith.maximumf %25, %27 : vector<4x8x1xf32>
    %29 = vector.broadcast %28 : vector<4x8x1xf32> to vector<4x8x4xf32>
    %30 = arith.subf %18, %29 : vector<4x8x4xf32>
    %31 = math.exp %30 : vector<4x8x4xf32>
    %32 = vector.broadcast %28 : vector<4x8x1xf32> to vector<4x8x8xf32>
    %33 = arith.subf %23, %32 : vector<4x8x8xf32>
    %34 = math.exp %33 : vector<4x8x8xf32>
    %cst_32 = arith.constant dense<0.000000e+00> : vector<4x8xf32>
    %35 = vector.multi_reduction <add>, %31, %cst_32 [2] : vector<4x8x4xf32> to vector<4x8xf32>
    %36 = vector.shape_cast %35 : vector<4x8xf32> to vector<4x8x1xf32>
    %cst_33 = arith.constant dense<0.000000e+00> : vector<4x8xf32>
    %37 = vector.multi_reduction <add>, %34, %cst_33 [2] : vector<4x8x8xf32> to vector<4x8xf32>
    %38 = vector.shape_cast %37 : vector<4x8xf32> to vector<4x8x1xf32>
    %39 = arith.addf %36, %38 : vector<4x8x1xf32>
    %40 = arith.truncf %31 : vector<4x8x4xf32> to vector<4x8x4xbf16>
    "tpu.trace_start"() <{level = 10 : i32, message = "nqp,npd->nqd"}> : () -> ()
    %cst_34 = arith.constant dense<0.000000e+00> : vector<4x8x8xf32>
    %41 = tpu.matmul %40, %9, %cst_34 {dimension_numbers = #tpu.dot_dimension_numbers<[2], [1], [1], [2], [0, 0, 0, 1, 1, 2], [0], [0]>} : vector<4x8x4xbf16>, vector<4x4x8xbf16>, vector<4x8x8xf32> -> vector<4x8x8xf32>
    "tpu.trace_stop"() : () -> ()
    %42 = arith.truncf %34 : vector<4x8x8xf32> to vector<4x8x8xbf16>
    "tpu.trace_start"() <{level = 10 : i32, message = "nqk,nkd->nqd"}> : () -> ()
    %cst_35 = arith.constant dense<0.000000e+00> : vector<4x8x8xf32>
    %43 = tpu.matmul %42, %5, %cst_35 {dimension_numbers = #tpu.dot_dimension_numbers<[2], [1], [1], [2], [0, 0, 0, 1, 1, 2], [0], [0]>} : vector<4x8x8xbf16>, vector<4x8x8xbf16>, vector<4x8x8xf32> -> vector<4x8x8xf32>
    "tpu.trace_stop"() : () -> ()
    %44 = arith.addf %41, %43 : vector<4x8x8xf32>
    %45 = tpu.reciprocal %39 {approx = true} : vector<4x8x1xf32> -> vector<4x8x1xf32>
    %46 = vector.broadcast %45 : vector<4x8x1xf32> to vector<4x8x8xf32>
    %47 = arith.mulf %44, %46 : vector<4x8x8xf32>
    %48 = arith.truncf %47 : vector<4x8x8xf32> to vector<4x8x8xbf16>
    %c0_36 = arith.constant 0 : index
    %c0_37 = arith.constant 0 : index
    %c0_38 = arith.constant 0 : index
    %c0_39 = arith.constant 0 : index
    %49 = vector.load %arg8[%c0_36, %c0_37, %c0_38, %c0_39] : memref<1x4x8x8xbf16, #tpu.memory_space<vmem>>, vector<1x4x8x8xbf16>
    %50 = vector.shape_cast %49 : vector<1x4x8x8xbf16> to vector<4x8x8xbf16>
    %51 = vector.shape_cast %48 : vector<4x8x8xbf16> to vector<1x4x8x8xbf16>
    tpu.vector_store %arg8[%c0_36, %c0_37, %c0_38, %c0_39], %51 {strides = array<i32>} : memref<1x4x8x8xbf16, #tpu.memory_space<vmem>>, vector<1x4x8x8xbf16>,
    return
  }
  func.func @transform_0(%arg0: i32) -> (i32, i32, i32, i32) {
    %c0_i32 = arith.constant 0 : i32
    %c0_i32_0 = arith.constant 0 : i32
    %c0_i32_1 = arith.constant 0 : i32
    %c0_i32_2 = arith.constant 0 : i32
    return %arg0, %c0_i32, %c0_i32_0, %c0_i32_1 : i32, i32, i32, i32
  }
  func.func @transform_1(%arg0: i32) -> (i32, i32, i32, i32) {
    %c0_i32 = arith.constant 0 : i32
    %c0_i32_0 = arith.constant 0 : i32
    %c0_i32_1 = arith.constant 0 : i32
    %c0_i32_2 = arith.constant 0 : i32
    return %arg0, %c0_i32, %c0_i32_0, %c0_i32_1 : i32, i32, i32, i32
  }
  func.func @transform_2(%arg0: i32) -> (i32, i32, i32, i32) {
    %c0_i32 = arith.constant 0 : i32
    %c0_i32_0 = arith.constant 0 : i32
    %c0_i32_1 = arith.constant 0 : i32
    %c0_i32_2 = arith.constant 0 : i32
    return %arg0, %c0_i32, %c0_i32_0, %c0_i32_1 : i32, i32, i32, i32
  }
  func.func @transform_3(%arg0: i32) -> (i32, i32, i32, i32) {
    %c0_i32 = arith.constant 0 : i32
    %c0_i32_0 = arith.constant 0 : i32
    %c0_i32_1 = arith.constant 0 : i32
    %c0_i32_2 = arith.constant 0 : i32
    return %arg0, %c0_i32, %c0_i32_0, %c0_i32_1 : i32, i32, i32, i32
  }
  func.func @transform_4(%arg0: i32) -> (i32, i32, i32, i32) {
    %c0_i32 = arith.constant 0 : i32
    %c0_i32_0 = arith.constant 0 : i32
    %c0_i32_1 = arith.constant 0 : i32
    %c0_i32_2 = arith.constant 0 : i32
    return %arg0, %c0_i32, %c0_i32_0, %c0_i32_1 : i32, i32, i32, i32
  }
  func.func @transform_5(%arg0: i32) -> (i32, i32, i32, i32) {
    %c0_i32 = arith.constant 0 : i32
    %c0_i32_0 = arith.constant 0 : i32
    %c0_i32_1 = arith.constant 0 : i32
    %c0_i32_2 = arith.constant 0 : i32
    return %arg0, %c0_i32, %c0_i32_0, %c0_i32_1 : i32, i32, i32, i32
  }
  func.func @transform_6(%arg0: i32) -> (i32, i32, i32, i32) {
    %c0_i32 = arith.constant 0 : i32
    %c0_i32_0 = arith.constant 0 : i32
    %c0_i32_1 = arith.constant 0 : i32
    %c0_i32_2 = arith.constant 0 : i32
    return %arg0, %c0_i32, %c0_i32_0, %c0_i32_1 : i32, i32, i32, i32
  }
  func.func @transform_7(%arg0: i32) -> (i32, i32, i32, i32) {
    %c0_i32 = arith.constant 0 : i32
    %c0_i32_0 = arith.constant 0 : i32
    %c0_i32_1 = arith.constant 0 : i32
    %c0_i32_2 = arith.constant 0 : i32
    return %arg0, %c0_i32, %c0_i32_0, %c0_i32_1 : i32, i32, i32, i32
  }
}

module attributes {stable_mosaic.version = 11 : i64} {
  func.func @_oproj_residual_kernel(%arg0: i32, %arg1: i32, %arg2: i32, %arg3: memref<1x1x8x8xbf16, #tpu.memory_space<vmem>>, %arg4: memref<1x32x8xbf16, #tpu.memory_space<vmem>>, %arg5: memref<1x32xf32, #tpu.memory_space<vmem>>, %arg6: memref<1x8x32xf32, #tpu.memory_space<vmem>>, %arg7: memref<1x8x32xf32, #tpu.memory_space<vmem>>, %arg8: memref<8x32xf32, #tpu.memory_space<vmem>>) attributes {dimension_semantics = [#tpu.dimension_semantics<parallel>, #tpu.dimension_semantics<parallel>, #tpu.dimension_semantics<arbitrary>], iteration_bounds = array<i64: 2, 1, 4>, scalar_prefetch = 0 : i64, scratch_operands = 1 : i64, tpu.core_type = #tpu.core_type<tc>, window_params = [{transform_indices = @transform_0, window_bounds = array<i64: 1, 1, 8, 8>}, {transform_indices = @transform_1, window_bounds = array<i64: 1, 32, 8>}, {transform_indices = @transform_2, window_bounds = array<i64: 1, 32>}, {transform_indices = @transform_3, window_bounds = array<i64: 1, 8, 32>}, {transform_indices = @transform_4, window_bounds = array<i64: 1, 8, 32>}]} {
    %c0_i32 = arith.constant 0 : i32
    %0 = arith.cmpi eq, %arg2, %c0_i32 : i32
    %1 = arith.extui %0 : i1 to i32
    %c0_i32_0 = arith.constant 0 : i32
    %2 = arith.cmpi ne, %1, %c0_i32_0 : i32
    scf.if %2 {
      %cst_12 = arith.constant 0.000000e+00 : f32
      %14 = vector.broadcast %cst_12 : f32 to vector<8x32xf32>
      %c0_13 = arith.constant 0 : index
      %c0_14 = arith.constant 0 : index
      %15 = vector.load %arg8[%c0_13, %c0_14] : memref<8x32xf32, #tpu.memory_space<vmem>>, vector<8x32xf32>
      tpu.vector_store %arg8[%c0_13, %c0_14], %14 {strides = array<i32>} : memref<8x32xf32, #tpu.memory_space<vmem>>, vector<8x32xf32>,
    } else {
    }
    %c0 = arith.constant 0 : index
    %c0_1 = arith.constant 0 : index
    %c0_2 = arith.constant 0 : index
    %c0_3 = arith.constant 0 : index
    %3 = vector.load %arg3[%c0, %c0_1, %c0_2, %c0_3] : memref<1x1x8x8xbf16, #tpu.memory_space<vmem>>, vector<1x1x8x8xbf16>
    %4 = vector.shape_cast %3 : vector<1x1x8x8xbf16> to vector<8x8xbf16>
    %c0_4 = arith.constant 0 : index
    %c0_5 = arith.constant 0 : index
    %c0_6 = arith.constant 0 : index
    %5 = vector.load %arg4[%c0_4, %c0_5, %c0_6] : memref<1x32x8xbf16, #tpu.memory_space<vmem>>, vector<1x32x8xbf16>
    %6 = vector.shape_cast %5 : vector<1x32x8xbf16> to vector<32x8xbf16>
    %c0_7 = arith.constant 0 : index
    %c0_8 = arith.constant 0 : index
    %7 = vector.load %arg8[%c0_7, %c0_8] : memref<8x32xf32, #tpu.memory_space<vmem>>, vector<8x32xf32>
    %cst = arith.constant dense<0.000000e+00> : vector<8x32xf32>
    %8 = tpu.matmul %4, %6, %cst {dimension_numbers = #tpu.dot_dimension_numbers<[1], [1], [0], [0], [0, 0, 1, 0], [], []>} : vector<8x8xbf16>, vector<32x8xbf16>, vector<8x32xf32> -> vector<8x32xf32>
    %9 = arith.addf %7, %8 : vector<8x32xf32>
    %c0_9 = arith.constant 0 : index
    %c0_10 = arith.constant 0 : index
    %10 = vector.load %arg8[%c0_9, %c0_10] : memref<8x32xf32, #tpu.memory_space<vmem>>, vector<8x32xf32>
    tpu.vector_store %arg8[%c0_9, %c0_10], %9 {strides = array<i32>} : memref<8x32xf32, #tpu.memory_space<vmem>>, vector<8x32xf32>,
    %c3_i32 = arith.constant 3 : i32
    %11 = arith.cmpi eq, %arg2, %c3_i32 : i32
    %12 = arith.extui %11 : i1 to i32
    %c0_i32_11 = arith.constant 0 : i32
    %13 = arith.cmpi ne, %12, %c0_i32_11 : i32
    scf.if %13 {
      %c0_12 = arith.constant 0 : index
      %c0_13 = arith.constant 0 : index
      %c0_14 = arith.constant 0 : index
      %14 = vector.load %arg6[%c0_12, %c0_13, %c0_14] : memref<1x8x32xf32, #tpu.memory_space<vmem>>, vector<1x8x32xf32>
      %15 = vector.shape_cast %14 : vector<1x8x32xf32> to vector<8x32xf32>
      %c0_15 = arith.constant 0 : index
      %c0_16 = arith.constant 0 : index
      %16 = vector.load %arg8[%c0_15, %c0_16] : memref<8x32xf32, #tpu.memory_space<vmem>>, vector<8x32xf32>
      %17 = arith.addf %15, %16 : vector<8x32xf32>
      %c0_17 = arith.constant 0 : index
      %c0_18 = arith.constant 0 : index
      %18 = vector.load %arg5[%c0_17, %c0_18] : memref<1x32xf32, #tpu.memory_space<vmem>>, vector<1x32xf32>
      %19 = vector.broadcast %18 : vector<1x32xf32> to vector<8x32xf32>
      %20 = arith.addf %17, %19 : vector<8x32xf32>
      %c0_19 = arith.constant 0 : index
      %c0_20 = arith.constant 0 : index
      %c0_21 = arith.constant 0 : index
      %21 = vector.load %arg7[%c0_19, %c0_20, %c0_21] : memref<1x8x32xf32, #tpu.memory_space<vmem>>, vector<1x8x32xf32>
      %22 = vector.shape_cast %21 : vector<1x8x32xf32> to vector<8x32xf32>
      %23 = vector.shape_cast %20 : vector<8x32xf32> to vector<1x8x32xf32>
      tpu.vector_store %arg7[%c0_19, %c0_20, %c0_21], %23 {strides = array<i32>} : memref<1x8x32xf32, #tpu.memory_space<vmem>>, vector<1x8x32xf32>,
    } else {
    }
    return
  }
  func.func @transform_0(%arg0: i32, %arg1: i32, %arg2: i32) -> (i32, i32, i32, i32) {
    %c0_i32 = arith.constant 0 : i32
    %c0_i32_0 = arith.constant 0 : i32
    %c0_i32_1 = arith.constant 0 : i32
    return %arg0, %arg2, %c0_i32, %c0_i32_0 : i32, i32, i32, i32
  }
  func.func @transform_1(%arg0: i32, %arg1: i32, %arg2: i32) -> (i32, i32, i32) {
    %c0_i32 = arith.constant 0 : i32
    %c0_i32_0 = arith.constant 0 : i32
    return %arg2, %arg1, %c0_i32 : i32, i32, i32
  }
  func.func @transform_2(%arg0: i32, %arg1: i32, %arg2: i32) -> (i32, i32) {
    %c0_i32 = arith.constant 0 : i32
    %c0_i32_0 = arith.constant 0 : i32
    return %c0_i32, %arg1 : i32, i32
  }
  func.func @transform_3(%arg0: i32, %arg1: i32, %arg2: i32) -> (i32, i32, i32) {
    %c0_i32 = arith.constant 0 : i32
    %c0_i32_0 = arith.constant 0 : i32
    return %arg0, %c0_i32, %arg1 : i32, i32, i32
  }
  func.func @transform_4(%arg0: i32, %arg1: i32, %arg2: i32) -> (i32, i32, i32) {
    %c0_i32 = arith.constant 0 : i32
    %c0_i32_0 = arith.constant 0 : i32
    return %arg0, %c0_i32, %arg1 : i32, i32, i32
  }
}

module attributes {stable_mosaic.version = 11 : i64} {
  func.func @_norm_gateup_kernel(%arg0: i32, %arg1: i32, %arg2: memref<8x32xf32, #tpu.memory_space<vmem>>, %arg3: memref<1x32xf32, #tpu.memory_space<vmem>>, %arg4: memref<64x32xbf16, #tpu.memory_space<vmem>>, %arg5: memref<1x64xf32, #tpu.memory_space<vmem>>, %arg6: memref<64x32xbf16, #tpu.memory_space<vmem>>, %arg7: memref<1x64xf32, #tpu.memory_space<vmem>>, %arg8: memref<8x64xbf16, #tpu.memory_space<vmem>>) attributes {dimension_semantics = [#tpu.dimension_semantics<parallel>, #tpu.dimension_semantics<parallel>], iteration_bounds = array<i64: 2, 1>, scalar_prefetch = 0 : i64, scratch_operands = 0 : i64, tpu.core_type = #tpu.core_type<tc>, window_params = [{transform_indices = @transform_0, window_bounds = array<i64: 8, 32>}, {pipeline_mode = #tpu.pipeline_mode<synchronous>, transform_indices = @transform_1, window_bounds = array<i64: 1, 32>}, {transform_indices = @transform_2, window_bounds = array<i64: 64, 32>}, {transform_indices = @transform_3, window_bounds = array<i64: 1, 64>}, {transform_indices = @transform_4, window_bounds = array<i64: 64, 32>}, {transform_indices = @transform_5, window_bounds = array<i64: 1, 64>}, {transform_indices = @transform_6, window_bounds = array<i64: 8, 64>}]} {
    %c0 = arith.constant 0 : index
    %c0_0 = arith.constant 0 : index
    %0 = vector.load %arg2[%c0, %c0_0] : memref<8x32xf32, #tpu.memory_space<vmem>>, vector<8x32xf32>
    %1 = arith.mulf %0, %0 : vector<8x32xf32>
    %cst = arith.constant dense<0.000000e+00> : vector<8xf32>
    %2 = vector.multi_reduction <add>, %1, %cst [1] : vector<8x32xf32> to vector<8xf32>
    %3 = vector.shape_cast %2 : vector<8xf32> to vector<8x1xf32>
    %cst_1 = arith.constant 3.200000e+01 : f32
    %4 = vector.broadcast %cst_1 : f32 to vector<8x1xf32>
    %5 = arith.divf %3, %4 : vector<8x1xf32>
    %cst_2 = arith.constant 9.99999997E-7 : f32
    %6 = vector.broadcast %cst_2 : f32 to vector<8x1xf32>
    %7 = arith.addf %5, %6 : vector<8x1xf32>
    %8 = math.rsqrt %7 : vector<8x1xf32>
    %9 = vector.broadcast %8 : vector<8x1xf32> to vector<8x32xf32>
    %10 = arith.mulf %0, %9 : vector<8x32xf32>
    %c0_3 = arith.constant 0 : index
    %c0_4 = arith.constant 0 : index
    %11 = vector.load %arg3[%c0_3, %c0_4] : memref<1x32xf32, #tpu.memory_space<vmem>>, vector<1x32xf32>
    %cst_5 = arith.constant 1.000000e+00 : f32
    %12 = vector.broadcast %cst_5 : f32 to vector<1x32xf32>
    %13 = arith.addf %12, %11 : vector<1x32xf32>
    %14 = vector.broadcast %13 : vector<1x32xf32> to vector<8x32xf32>
    %15 = arith.mulf %10, %14 : vector<8x32xf32>
    %16 = arith.truncf %15 : vector<8x32xf32> to vector<8x32xbf16>
    %c0_6 = arith.constant 0 : index
    %c0_7 = arith.constant 0 : index
    %17 = vector.load %arg4[%c0_6, %c0_7] : memref<64x32xbf16, #tpu.memory_space<vmem>>, vector<64x32xbf16>
    %cst_8 = arith.constant dense<0.000000e+00> : vector<8x64xf32>
    %18 = tpu.matmul %16, %17, %cst_8 {dimension_numbers = #tpu.dot_dimension_numbers<[1], [1], [0], [0], [0, 0, 1, 0], [], []>} : vector<8x32xbf16>, vector<64x32xbf16>, vector<8x64xf32> -> vector<8x64xf32>
    %c0_9 = arith.constant 0 : index
    %c0_10 = arith.constant 0 : index
    %19 = vector.load %arg5[%c0_9, %c0_10] : memref<1x64xf32, #tpu.memory_space<vmem>>, vector<1x64xf32>
    %20 = vector.broadcast %19 : vector<1x64xf32> to vector<8x64xf32>
    %21 = arith.addf %18, %20 : vector<8x64xf32>
    %c0_11 = arith.constant 0 : index
    %c0_12 = arith.constant 0 : index
    %22 = vector.load %arg6[%c0_11, %c0_12] : memref<64x32xbf16, #tpu.memory_space<vmem>>, vector<64x32xbf16>
    %cst_13 = arith.constant dense<0.000000e+00> : vector<8x64xf32>
    %23 = tpu.matmul %16, %22, %cst_13 {dimension_numbers = #tpu.dot_dimension_numbers<[1], [1], [0], [0], [0, 0, 1, 0], [], []>} : vector<8x32xbf16>, vector<64x32xbf16>, vector<8x64xf32> -> vector<8x64xf32>
    %c0_14 = arith.constant 0 : index
    %c0_15 = arith.constant 0 : index
    %24 = vector.load %arg7[%c0_14, %c0_15] : memref<1x64xf32, #tpu.memory_space<vmem>>, vector<1x64xf32>
    %25 = vector.broadcast %24 : vector<1x64xf32> to vector<8x64xf32>
    %26 = arith.addf %23, %25 : vector<8x64xf32>
    %27 = arith.negf %21 : vector<8x64xf32>
    %28 = math.exp %27 : vector<8x64xf32>
    %cst_16 = arith.constant 1.000000e+00 : f32
    %29 = vector.broadcast %cst_16 : f32 to vector<8x64xf32>
    %30 = arith.addf %29, %28 : vector<8x64xf32>
    %31 = arith.divf %29, %30 : vector<8x64xf32>
    %cst_17 = arith.constant 5.000000e-01 : f32
    %32 = vector.broadcast %cst_17 : f32 to vector<8x64xf32>
    %33 = arith.mulf %32, %26 : vector<8x64xf32>
    %cst_18 = arith.constant 4.471500e-02 : f32
    %34 = vector.broadcast %cst_18 : f32 to vector<8x64xf32>
    %35 = arith.mulf %34, %26 : vector<8x64xf32>
    %36 = arith.mulf %35, %26 : vector<8x64xf32>
    %37 = arith.mulf %36, %26 : vector<8x64xf32>
    %38 = arith.addf %26, %37 : vector<8x64xf32>
    %cst_19 = arith.constant 0.797884583 : f32
    %39 = vector.broadcast %cst_19 : f32 to vector<8x64xf32>
    %40 = arith.mulf %39, %38 : vector<8x64xf32>
    %41 = math.tanh %40 : vector<8x64xf32>
    %cst_20 = arith.constant 1.000000e+00 : f32
    %42 = vector.broadcast %cst_20 : f32 to vector<8x64xf32>
    %43 = arith.addf %42, %41 : vector<8x64xf32>
    %44 = arith.mulf %33, %43 : vector<8x64xf32>
    %45 = arith.mulf %31, %44 : vector<8x64xf32>
    %46 = arith.truncf %45 : vector<8x64xf32> to vector<8x64xbf16>
    %c0_21 = arith.constant 0 : index
    %c0_22 = arith.constant 0 : index
    %47 = vector.load %arg8[%c0_21, %c0_22] : memref<8x64xbf16, #tpu.memory_space<vmem>>, vector<8x64xbf16>
    tpu.vector_store %arg8[%c0_21, %c0_22], %46 {strides = array<i32>} : memref<8x64xbf16, #tpu.memory_space<vmem>>, vector<8x64xbf16>,
    return
  }
  func.func @transform_0(%arg0: i32, %arg1: i32) -> (i32, i32) {
    %c0_i32 = arith.constant 0 : i32
    %c0_i32_0 = arith.constant 0 : i32
    return %arg0, %c0_i32 : i32, i32
  }
  func.func @transform_1(%arg0: i32, %arg1: i32) -> (i32, i32) {
    %c0_i32 = arith.constant 0 : i32
    %c0_i32_0 = arith.constant 0 : i32
    %c0_i32_1 = arith.constant 0 : i32
    return %c0_i32, %c0_i32_0 : i32, i32
  }
  func.func @transform_2(%arg0: i32, %arg1: i32) -> (i32, i32) {
    %c0_i32 = arith.constant 0 : i32
    %c0_i32_0 = arith.constant 0 : i32
    return %arg1, %c0_i32 : i32, i32
  }
  func.func @transform_3(%arg0: i32, %arg1: i32) -> (i32, i32) {
    %c0_i32 = arith.constant 0 : i32
    %c0_i32_0 = arith.constant 0 : i32
    return %c0_i32, %arg1 : i32, i32
  }
  func.func @transform_4(%arg0: i32, %arg1: i32) -> (i32, i32) {
    %c0_i32 = arith.constant 0 : i32
    %c0_i32_0 = arith.constant 0 : i32
    return %arg1, %c0_i32 : i32, i32
  }
  func.func @transform_5(%arg0: i32, %arg1: i32) -> (i32, i32) {
    %c0_i32 = arith.constant 0 : i32
    %c0_i32_0 = arith.constant 0 : i32
    return %c0_i32, %arg1 : i32, i32
  }
  func.func @transform_6(%arg0: i32, %arg1: i32) -> (i32, i32) {
    %c0_i32 = arith.constant 0 : i32
    return %arg0, %arg1 : i32, i32
  }
}

module attributes {stable_mosaic.version = 11 : i64} {
  func.func @_down_residual_kernel(%arg0: i32, %arg1: i32, %arg2: i32, %arg3: memref<8x64xbf16, #tpu.memory_space<vmem>>, %arg4: memref<32x64xbf16, #tpu.memory_space<vmem>>, %arg5: memref<1x32xf32, #tpu.memory_space<vmem>>, %arg6: memref<8x32xf32, #tpu.memory_space<vmem>>, %arg7: memref<8x32xf32, #tpu.memory_space<vmem>>, %arg8: memref<8x32xf32, #tpu.memory_space<vmem>>) attributes {dimension_semantics = [#tpu.dimension_semantics<parallel>, #tpu.dimension_semantics<parallel>, #tpu.dimension_semantics<arbitrary>], iteration_bounds = array<i64: 2, 1, 1>, scalar_prefetch = 0 : i64, scratch_operands = 1 : i64, tpu.core_type = #tpu.core_type<tc>, window_params = [{transform_indices = @transform_0, window_bounds = array<i64: 8, 64>}, {transform_indices = @transform_1, window_bounds = array<i64: 32, 64>}, {transform_indices = @transform_2, window_bounds = array<i64: 1, 32>}, {transform_indices = @transform_3, window_bounds = array<i64: 8, 32>}, {transform_indices = @transform_4, window_bounds = array<i64: 8, 32>}]} {
    %c0_i32 = arith.constant 0 : i32
    %0 = arith.cmpi eq, %arg2, %c0_i32 : i32
    %1 = arith.extui %0 : i1 to i32
    %c0_i32_0 = arith.constant 0 : i32
    %2 = arith.cmpi ne, %1, %c0_i32_0 : i32
    scf.if %2 {
      %cst_10 = arith.constant 0.000000e+00 : f32
      %12 = vector.broadcast %cst_10 : f32 to vector<8x32xf32>
      %c0_11 = arith.constant 0 : index
      %c0_12 = arith.constant 0 : index
      %13 = vector.load %arg8[%c0_11, %c0_12] : memref<8x32xf32, #tpu.memory_space<vmem>>, vector<8x32xf32>
      tpu.vector_store %arg8[%c0_11, %c0_12], %12 {strides = array<i32>} : memref<8x32xf32, #tpu.memory_space<vmem>>, vector<8x32xf32>,
    } else {
    }
    %c0 = arith.constant 0 : index
    %c0_1 = arith.constant 0 : index
    %3 = vector.load %arg8[%c0, %c0_1] : memref<8x32xf32, #tpu.memory_space<vmem>>, vector<8x32xf32>
    %c0_2 = arith.constant 0 : index
    %c0_3 = arith.constant 0 : index
    %4 = vector.load %arg3[%c0_2, %c0_3] : memref<8x64xbf16, #tpu.memory_space<vmem>>, vector<8x64xbf16>
    %c0_4 = arith.constant 0 : index
    %c0_5 = arith.constant 0 : index
    %5 = vector.load %arg4[%c0_4, %c0_5] : memref<32x64xbf16, #tpu.memory_space<vmem>>, vector<32x64xbf16>
    %cst = arith.constant dense<0.000000e+00> : vector<8x32xf32>
    %6 = tpu.matmul %4, %5, %cst {dimension_numbers = #tpu.dot_dimension_numbers<[1], [1], [0], [0], [0, 0, 1, 0], [], []>} : vector<8x64xbf16>, vector<32x64xbf16>, vector<8x32xf32> -> vector<8x32xf32>
    %7 = arith.addf %3, %6 : vector<8x32xf32>
    %c0_6 = arith.constant 0 : index
    %c0_7 = arith.constant 0 : index
    %8 = vector.load %arg8[%c0_6, %c0_7] : memref<8x32xf32, #tpu.memory_space<vmem>>, vector<8x32xf32>
    tpu.vector_store %arg8[%c0_6, %c0_7], %7 {strides = array<i32>} : memref<8x32xf32, #tpu.memory_space<vmem>>, vector<8x32xf32>,
    %c0_i32_8 = arith.constant 0 : i32
    %9 = arith.cmpi eq, %arg2, %c0_i32_8 : i32
    %10 = arith.extui %9 : i1 to i32
    %c0_i32_9 = arith.constant 0 : i32
    %11 = arith.cmpi ne, %10, %c0_i32_9 : i32
    scf.if %11 {
      %c0_10 = arith.constant 0 : index
      %c0_11 = arith.constant 0 : index
      %12 = vector.load %arg6[%c0_10, %c0_11] : memref<8x32xf32, #tpu.memory_space<vmem>>, vector<8x32xf32>
      %c0_12 = arith.constant 0 : index
      %c0_13 = arith.constant 0 : index
      %13 = vector.load %arg8[%c0_12, %c0_13] : memref<8x32xf32, #tpu.memory_space<vmem>>, vector<8x32xf32>
      %14 = arith.addf %12, %13 : vector<8x32xf32>
      %c0_14 = arith.constant 0 : index
      %c0_15 = arith.constant 0 : index
      %15 = vector.load %arg5[%c0_14, %c0_15] : memref<1x32xf32, #tpu.memory_space<vmem>>, vector<1x32xf32>
      %16 = vector.broadcast %15 : vector<1x32xf32> to vector<8x32xf32>
      %17 = arith.addf %14, %16 : vector<8x32xf32>
      %c0_16 = arith.constant 0 : index
      %c0_17 = arith.constant 0 : index
      %18 = vector.load %arg7[%c0_16, %c0_17] : memref<8x32xf32, #tpu.memory_space<vmem>>, vector<8x32xf32>
      tpu.vector_store %arg7[%c0_16, %c0_17], %17 {strides = array<i32>} : memref<8x32xf32, #tpu.memory_space<vmem>>, vector<8x32xf32>,
    } else {
    }
    return
  }
  func.func @transform_0(%arg0: i32, %arg1: i32, %arg2: i32) -> (i32, i32) {
    %c0_i32 = arith.constant 0 : i32
    return %arg0, %arg2 : i32, i32
  }
  func.func @transform_1(%arg0: i32, %arg1: i32, %arg2: i32) -> (i32, i32) {
    %c0_i32 = arith.constant 0 : i32
    return %arg1, %arg2 : i32, i32
  }
  func.func @transform_2(%arg0: i32, %arg1: i32, %arg2: i32) -> (i32, i32) {
    %c0_i32 = arith.constant 0 : i32
    %c0_i32_0 = arith.constant 0 : i32
    return %c0_i32, %arg1 : i32, i32
  }
  func.func @transform_3(%arg0: i32, %arg1: i32, %arg2: i32) -> (i32, i32) {
    %c0_i32 = arith.constant 0 : i32
    return %arg0, %arg1 : i32, i32
  }
  func.func @transform_4(%arg0: i32, %arg1: i32, %arg2: i32) -> (i32, i32) {
    %c0_i32 = arith.constant 0 : i32
    return %arg0, %arg1 : i32, i32
  }
}

</mosaic_0001>

<bundles_post_ra>
// kernel: decoder_layer_forward.5
= control target key start
LH: loop header
LB: loop body
LE: loop exit
PB: predicated region body
PF: predicated region fallthrough
CT: control target
= control target key end

     0   :  { %s610_s15 = smov 0   ;;  %s612_s16 = smov 0   ;;  %s679_s0 = inlined_call_operand.vmem [shape: f32[16,32], index: 0, kind: input, shape index: {}]   ;;  %s680_s1 = inlined_call_operand.vmem [shape: f32[1,32], index: 1, kind: input, shape index: {}]   ;;  %s681_s2 = inlined_call_operand.vmem [shape: bf16[96,32], index: 2, kind: input, shape index: {}]   ;;  %s682_s3 = inlined_call_operand.vmem [shape: f32[1,96], index: 3, kind: input, shape index: {}]   ;;  %s683_s4 = inlined_call_operand.vmem [shape: bf16[16,96], index: 4, kind: output, shape index: {}]  }
   0x1   :  { %s614_s17 = smov 0  }
   0x2 LB: > { %s26_s18 = sadd.s32 1, %s577_s16  ;;  %p489_p0 = scmp.ge.s32.totalorder %s581_s17, 1  ;;  %s581_s17 = sphi %s614_s17, %s14_s17   ;;  %s577_s16 = sphi %s612_s16, %s685_s16   ;;  %s573_s15 = sphi %s610_s15, %s684_s15  }
   0x3   : > { %p28_p1 = scmp.ge.s32.totalorder %s26_s18, 2  ;;  %p194_p2 = scmp.lt.s32.totalorder %s581_s17, 3 }
   0x5   : > { %s687_s18 = smov (%p28_p1, %s26_s18), 0  ;;  %p195_p3 = pnand %p489_p0, %p194_p2 }
   0x6   : > { %p229_p4 = scmp.lt.s32.totalorder (!%p195_p3), %s573_s15, 1  ;;  %vm252_vm0 = vcmask (!%p195_p3), 261120   ;;  %v551_v0 = vld [vmem:[%s681_s2] sm:$0xff] (!%p195_p3)   ;;  %v583_v1 = vmov (!%p195_p3), 0.0   ;;  %v552_v3 = vld [vmem:[%s681_s2 + $0x8] sm:$0xff] (!%p195_p3)   ;;  %v553_v8 = vld [vmem:[%s681_s2 + $0x10] sm:$0xff] (!%p195_p3)   ;;  %v264_v18 = vlaneseq (!%p195_p3) }
   0x7   : > { %198 = sbr.rel (%p195_p3) target bundleno = 401 (0x191), region = 36  ;;  %509 = vmatprep.subr.bf16.mxu0 (!%p195_p3), %v583_v1  ;;  %v324_v2 = vsel (!%p195_p3), %vm252_vm0, %v551_v0, 0  ;;  %v327_v6 = vsel (!%p195_p3), %vm252_vm0, %v552_v3, 0  ;;  %v330_v9 = vsel (!%p195_p3), %vm252_vm0, %v553_v8, 0  ;;  %v554_v10 = vld [vmem:[%s681_s2 + $0x18] sm:$0xff] (!%p195_p3)   ;;  %v555_v12 = vld [vmem:[%s681_s2 + $0x20] sm:$0xff] (!%p195_p3)  }
   0x8   : > { %510 = vmatpush3.bf16.xpose.msra.mxu0 (!%p195_p3), %v324_v2  ;;  %v333_v11 = vsel (!%p195_p3), %vm252_vm0, %v554_v10, 0  ;;  %vm584_vm1 = vmmov (!%p195_p3), 0   ;;  %v336_v13 = vsel (!%p195_p3), %vm252_vm0, %v555_v12, 0  ;;  %v556_v14 = vld [vmem:[%s681_s2 + $0x28] sm:$0xff] (!%p195_p3)   ;;  %v265_v20 = vshrl.u32 (!%p195_p3), %v264_v18, 7 }
   0x9   : > { %511 = vmatprep.subr.bf16.mxu0 (!%p195_p3), %v583_v1  ;;  %521 = vmatprep.mubr.msk.bf16.mxu0 (!%p195_p3), %vm584_vm1, %v583_v1  ;;  %v339_v15 = vsel (!%p195_p3), %vm252_vm0, %v556_v14, 0  ;;  %v261_v21 = vld [vmem:[%s680_s1] sm:$0x1] (!%p195_p3)  ;;  %vm382_vm2 = vcmask (!%p195_p3), 781312  }
   0xa   : > { %v262_v22 = vadd.f32 (!%p195_p3), 1.0, %v261_v21  ;;  %v266_v23 = vsub.s32 (!%p195_p3), 0, %v265_v20  ;;  %v492_v29 = vld [vmem:[%s682_s3] ss:$0 sm:$0xff] (!%p195_p3) }
   0xc   : > { %v267_v24 = vrot.slane (!%p195_p3), %v262_v22, %v266_v23 }
   0xe   : > { %s689_s15 = smov (!%p229_p4, %s573_s15), 1 }
   0xf   : > { %s490_s21 = sshll.u32 %s689_s15, 3  ;;  %s491_s13 = sshll.u32 %s689_s15, 2 }
  0x10   : > { %s232_s26 = scalar_lea.vmem %s679_s0, %s490_s21  ;;  %512 = vmatpush3.bf16.xpose.msra.mxu0 %v327_v6  ;;  %s248_s20 = scalar_lea.vmem %s683_s4, %s491_s13 }
  0x11   : > { %v250_v4 = vld [vmem:[%s232_s26] sm:$0xff]  ;;  %513 = vmatprep.subr.bf16.mxu0 %v583_v1 }
  0x12   : > { %v251_v5 = vmul.f32 %v250_v4, %v250_v4 }
  0x14   : > { %v253_v7 = vsel %vm252_vm0, %v251_v5, 0.0 }
  0x15   : > { %254 = vadd.xlane.f32.xlu0 %v253_v7 }
  0x18   : > { %514 = vmatpush3.bf16.xpose.msra.mxu0 %v330_v9 }
  0x19   : > { %515 = vmatprep.subr.bf16.mxu0 %v583_v1 }
  0x20   : > { %516 = vmatpush3.bf16.xpose.msra.mxu0 %v333_v11 }
  0x21   : > { %517 = vmatprep.subr.bf16.mxu0 %v583_v1 }
  0x28   : > { %518 = vmatpush3.bf16.xpose.msra.mxu0 %v336_v13 }
  0x29   : > { %519 = vmatprep.subr.bf16.mxu0 %v583_v1 }
  0x30   : > { %520 = vmatpush3.bf16.xpose.msra.mxu0 %v339_v15 }
  0xa2   : > { %v255_v16 = vpop.xlane.xlu0 %254 }
  0xa3   : > { %v257_v17 = vmul.f32 0.03125, %v255_v16 }
  0xa5   : > { %v258_v19 = vadd.f32 1e-06, %v257_v17 }
  0xa7   : > { %557 = vrsqrt.f32 %v258_v19 }
  0xb1   : > { %v558_v25 = vpop.eup %557 }
  0xb2   : > { %v260_v26 = vmul.f32 %v558_v25, %v250_v4 }
  0xb4   : > { %v269_v27 = vmul.f32 %v267_v24, %v260_v26 }
  0xb6   : > { %v270_v28 = vpack.c.bf16 %v269_v27, %v269_v27 }
  0xb8   : > { %522 = vmatmul.mubr.msk.bf16.vlgmr.msra.gmra.mrb[0].mxu0 %vm252_vm0, %v270_v28 }
 0x18b   : > { %v375_v30 = vpop.f32.mrb[0].mxu0 }
 0x18c   : > { %v376_v31 = vadd.f32 %v492_v29, %v375_v30  ;;  %v523_v32 = vpop.f32.mrb[1].mxu0 }
 0x18d   : > { %v378_v33 = vpop.f32.mrb[2].mxu0 }
 0x18e   : > { %v381_v34 = vpack.c.bf16 %v376_v31, %v376_v31  ;;  %v524_v35 = vpop.f32.mrb[3].mxu0 }
 0x190   : > { %383 = vst.msk [vmem:[%s248_s20] sm:$0xf] %vm382_vm2, %v381_v34 }
 0x191 PF: > { %s14_s17 = sadd.s32 1, %s581_s17   ;;  %s684_s15 = smov %s577_s16 }
 0x192   : > { %p11_p5 = scmp.ge.s32.totalorder %s14_s17, 4   ;;  %s685_s16 = smov %s687_s18 }
 0x194   :  { %13 = sbr.rel (!%p11_p5) target bundleno = 2 (0x2), region = 72 }

// kernel: decoder_layer_forward.7
= control target key start
LH: loop header
LB: loop body
LE: loop exit
PB: predicated region body
PF: predicated region fallthrough
CT: control target
= control target key end

     0   :  { %s678_s15 = smov 0   ;;  %s680_s16 = smov 0   ;;  %s750_s0 = inlined_call_operand.vmem [shape: bf16[2,4,8,8], index: 0, kind: input, shape index: {}]   ;;  %s751_s1 = inlined_call_operand.vmem [shape: bf16[4,32,8], index: 1, kind: input, shape index: {}]   ;;  %s752_s2 = inlined_call_operand.vmem [shape: f32[1,32], index: 2, kind: input, shape index: {}]   ;;  %s753_s3 = inlined_call_operand.vmem [shape: f32[2,8,32], index: 3, kind: input, shape index: {}]   ;;  %s754_s4 = inlined_call_operand.vmem [shape: f32[2,8,32], index: 4, kind: output, shape index: {}]  }
   0x1   :  { %s682_s17 = smov 0   ;;  %s684_s18 = smov 0  }
   0x2   :  { %s686_s19 = smov 0  }
   0x3 LB: > { %s26_s20 = sadd.s32 1, %s640_s17  ;;  %s33_s21 = sadd.s32 1, %s644_s18  ;;  %s648_s19 = sphi %s686_s19, %s14_s19   ;;  %s644_s18 = sphi %s684_s18, %s758_s18   ;;  %s640_s17 = sphi %s682_s17, %s757_s17   ;;  %s636_s16 = sphi %s680_s16, %s756_s16   ;;  %s632_s15 = sphi %s678_s15, %s755_s15  }
   0x4   : > { %p27_p0 = scmp.ge.s32.totalorder %s26_s20, 4  ;;  %p538_p1 = scmp.ge.s32.totalorder %s648_s19, 1 }
   0x5   : > { %p227_p2 = scmp.lt.s32.totalorder %s648_s19, 9 }
   0x6   : > { %s760_s20 = smov (%p27_p0, %s26_s20), 0  ;;  %s762_s21 = smov (!%p27_p0, %s33_s21), %s644_s18 }
   0x7   : > { %p228_p3 = pnand %p538_p1, %p227_p2  ;;  %p35_p4 = scmp.ge.s32.totalorder %s762_s21, 2 }
   0x8   : > { %p277_p5 = scmp.lt.s32.totalorder (!%p228_p3), %s636_s16, 1  ;;  %p279_p6 = scmp.lt.s32.totalorder (!%p228_p3), %s632_s15, 3 }
   0x9   : > { %s764_s21 = smov (%p35_p4, %s762_s21), 0  ;;  %231 = sbr.rel (%p228_p3) target bundleno = 267 (0x10b), region = 36 }
   0xa   : > { %p545_p7 = scmp.ne.s32.totalorder (!%p228_p3), %s632_s15, 0 }
  0x10   : > { %s766_s16 = smov (!%p277_p5, %s636_s16), 1  ;;  %316 = sbr.rel (%p545_p7) target bundleno = 23 (0x17), region = 40 }
  0x11   : > { %s280_s22 = scalar_select %p279_p6, %s632_s15, 3 }
  0x12   : > { %s539_s23 = sshll.u32 %s766_s16, 2  ;;  %s543_s24 = sshll.u32 %s766_s16, 3  ;;  %vm317_vm0 = vcmask (!%p545_p7), 261120   ;;  %v650_v0 = vmov (!%p545_p7), 0.0  }
  0x13   : > { %s282_s25 = sadd.s32 %s539_s23, %s280_s22  ;;  %s553_s26 = sshll.u32 %s280_s22, 4  ;;  %318 = vst.msk [vmem:[#allocation2] sm:$0xff] (!%p545_p7), %vm317_vm0, %v650_v0 }
  0x14   : > { %s540_s27 = sshll.u32 %s282_s25, 2  ;;  %s293_s30 = scalar_lea.vmem %s751_s1, %s553_s26 }
  0x15   : > { %s284_s7 = scalar_lea.vmem %s750_s0, %s540_s27  ;;  %s721_s10 = scalar_lea.vmem %s753_s3, %s543_s24 }
  0x16   : > { %s726_s13 = scalar_lea.vmem %s754_s4, %s543_s24 }
  0x17 PF: > { %v608_v1 = vld [vmem:[%s293_s30] sm:$0xff]   ;;  %v651_v2 = vmov 0.0   ;;  %vm335_vm1 = vcmask 64512   ;;  %vm652_vm2 = vmmov 0   ;;  %v609_v4 = vld [vmem:[%s293_s30 + $0x8] sm:$0xff]   ;;  %vm386_vm3 = vcmask 261120  }
  0x18   : > { %557 = vmatprep.subr.bf16.mxu0 %v651_v2  ;;  %v340_v3 = vsel %vm335_vm1, %v608_v1, 0  ;;  %561 = vmatprep.mubr.msk.bf16.mxu0 %vm652_vm2, %v651_v2  ;;  %v343_v5 = vsel %vm335_vm1, %v609_v4, 0  ;;  %v319_v6 = vld [vmem:[%s284_s7] sm:$0xf]  ;;  %p549_p8 = scmp.ne.s32.totalorder %s632_s15, 3 }
  0x19   : > { %558 = vmatpush3.bf16.xpose.msra.mxu0 %v340_v3  ;;  %v392_v13 = vld [vmem:[%s721_s10] sm:$0xff] (!%p549_p8) }
  0x1a   : > { %559 = vmatprep.subr.bf16.mxu0 %v651_v2  ;;  %v324_v7 = vld [vmem:[#allocation2] sm:$0xff] }
  0x1b   : > { %v550_v15 = vld [vmem:[%s752_s2] ss:$0 sm:$0xff] (!%p549_p8) }
  0x21   : > { %560 = vmatpush3.bf16.xpose.msra.mxu0 %v343_v5 }
  0x28   : > { %562 = vmatmul.mubr.msk.bf16.vlgmr.msra.gmra.mrb[0].mxu0 %vm335_vm1, %v319_v6 }
  0xf8   : > { %391 = sbr.rel (%p549_p8) target bundleno = 267 (0x10b), region = 44 }
  0xfb   : > { %v379_v8 = vpop.f32.mrb[0].mxu0 }
  0xfc   : > { %v385_v9 = vadd.f32 %v379_v8, %v324_v7  ;;  %v563_v10 = vpop.f32.mrb[1].mxu0 }
  0xfd   : > { %v382_v11 = vpop.f32.mrb[2].mxu0 }
  0xfe   : > { %387 = vst.msk [vmem:[#allocation2] sm:$0xff] %vm386_vm3, %v385_v9  ;;  %v564_v12 = vpop.f32.mrb[3].mxu0 }
 0x105   : > { %v393_v14 = vld [vmem:[#allocation2] sm:$0xff] }
 0x106   : > { %v394_v16 = vadd.f32 %v393_v14, %v392_v13 }
 0x108   : > { %v402_v17 = vadd.f32 %v550_v15, %v394_v16 }
 0x10a   : > { %403 = vst.msk [vmem:[%s726_s13] sm:$0xff] %vm386_vm3, %v402_v17 }
 0x10b PF: > { %s14_s19 = sadd.s32 1, %s648_s19   ;;  %s755_s15 = smov %s640_s17 }
 0x10c   : > { %p11_p9 = scmp.ge.s32.totalorder %s14_s19, 10   ;;  %s756_s16 = smov %s644_s18 }
 0x10d   : > { %s757_s17 = smov %s760_s20  ;;  %s758_s18 = smov %s764_s21 }
 0x10e   :  { %13 = sbr.rel (!%p11_p9) target bundleno = 3 (0x3), region = 83 }

// kernel: decoder_layer_forward.9
= control target key start
LH: loop header
LB: loop body
LE: loop exit
PB: predicated region body
PF: predicated region fallthrough
CT: control target
= control target key end

     0   :  { %9 = vsyncpa [#allocation4], 0  ;;  %s851_s0 = inlined_call_operand.vmem [shape: bf16[16,64], index: 0, kind: input, shape index: {}]   ;;  %s852_s1 = inlined_call_operand.vmem [shape: bf16[32,64], index: 1, kind: input, shape index: {}]   ;;  %s853_s2 = inlined_call_operand.vmem [shape: f32[1,32], index: 2, kind: input, shape index: {}]   ;;  %s854_s3 = inlined_call_operand.vmem [shape: f32[16,32], index: 3, kind: input, shape index: {}]   ;;  %s855_s4 = inlined_call_operand.hbm [shape: f32[16,32], index: 4, kind: output, shape index: {}]  }
   0x1   :  { %11 = vsyncpa [#allocation4 + $0x1], 0  ;;  %s721_s15 = smov 0   ;;  %s723_s16 = smov 0  }
   0x2   :  { %s725_s17 = smov 0   ;;  %s727_s18 = smov 0  }
   0x3   :  { %s729_s19 = smov 0   ;;  %s731_s20 = smov 0  }
   0x4 LB: > { %s525_s21 = sadd.s32 4294967295, %s691_s20   ;;  %s526_s22 = sadd.s32 4294967294, %s691_s20   ;;  %s691_s20 = sphi %s731_s20, %s17_s20   ;;  %s687_s19 = sphi %s729_s19, %s862_s19   ;;  %s683_s18 = sphi %s727_s18, %s861_s18   ;;  %s679_s17 = sphi %s725_s17, %s860_s17   ;;  %s675_s16 = sphi %s723_s16, %s859_s16   ;;  %s671_s15 = sphi %s721_s15, %s858_s15  }
   0x5   : > { %s36_s23 = sadd.s32 1, %s687_s19  ;;  %s155_s24 = sadd.s32 1, %s679_s17 }
   0x6   : > { %p38_p0 = scmp.ge.s32.totalorder %s36_s23, 2  ;;  %p165_p1 = scmp.ne.s32.totalorder %s679_s17, %s675_s16 }
   0x7   : > { %p166_p2 = scmp.eq.s32.totalorder %s525_s21, 1  ;;  %p171_p3 = scmp.ne.s32.totalorder %s675_s16, %s671_s15 }
   0x8   : > { %s864_s23 = smov (%p38_p0, %s36_s23), 0  ;;  %p172_p5 = scmp.eq.s32.totalorder %s526_s22, 1 }
   0x9   : > { %p761_p4 = por %p166_p2, %p165_p1  ;;  %s150_s26 = ssub.s32 %s687_s19, %s864_s23 }
   0xa   : > { %p531_p6 = scmp.ge.s32.totalorder %s691_s20, 1  ;;  %p153_p7 = scmp.eq.s32.totalorder %s150_s26, 0 }
   0xb   : > { %p768_p8 = por %p172_p5, %p171_p3  ;;  %p228_p9 = scmp.lt.s32.totalorder %s691_s20, 3 }
   0xc   : > { %s774_s28 = scalar_select %p153_p7, %s679_s17, %s155_s24  }
   0xd   : > { %p229_p10 = pnand %p531_p6, %p228_p9 }
   0xe   : > { %v611_v0 = vld [vmem:[%s852_s1] sm:$0xff] (!%p229_p10)   ;;  %v693_v1 = vmov (!%p229_p10), 0.0   ;;  %vm323_vm0 = vcmask (!%p229_p10), 523264   ;;  %p274_p11 = scmp.lt.s32.totalorder (!%p229_p10), %s683_s18, 1  ;;  %vm305_vm1 = vcmask (!%p229_p10), 261120   ;;  %vm694_vm2 = vmmov (!%p229_p10), 0  }
   0xf   : > { %232 = sbr.rel (%p229_p10) target bundleno = 271 (0x10f), region = 36  ;;  %546 = vmatprep.subr.bf16.mxu0 (!%p229_p10), %v693_v1  ;;  %v328_v2 = vsel (!%p229_p10), %vm323_vm0, %v611_v0, 0  ;;  %550 = vmatprep.mubr.msk.bf16.mxu0 (!%p229_p10), %vm694_vm2, %v693_v1  ;;  %306 = vst.msk [vmem:[#allocation2] sm:$0xff] (!%p229_p10), %vm305_vm1, %v693_v1  ;;  %v612_v3 = vld [vmem:[%s852_s1 + $0x8] sm:$0xff] (!%p229_p10)   ;;  %s271_s12 = sand.u32 (!%p229_p10), 1, %s675_s16  }
  0x10   : > { %547 = vmatpush3.bf16.xpose.msra.mxu0 (!%p229_p10), %v328_v2  ;;  %v331_v4 = vsel (!%p229_p10), %vm323_vm0, %v612_v3, 0  ;;  %s532_s14 = sshll.u32 (!%p229_p10), %s271_s12, 3  ;;  %v538_v14 = vld [vmem:[%s853_s2] ss:$0 sm:$0xff] (!%p229_p10)  ;;  %s540_s30 = sshll.u32 (!%p229_p10), %s683_s18, 7 }
  0x11   : > { %548 = vmatprep.subr.bf16.mxu0 (!%p229_p10), %v693_v1  ;;  %s273_s5 = scalar_lea.vmem (!%p229_p10), [#allocation3], %s532_s14  ;;  %s803_s9 = scalar_lea.hbm (!%p229_p10), %s855_s4, %s540_s30 }
  0x12   : > { %s406_s6 = sshll.u32 (!%p229_p10), %s273_s5, 4  ;;  %s392_s10 = scalar_lea.sflag (!%p229_p10), [#allocation4], %s271_s12  ;;  %s805_s6 = int_to_ptr.vmem [resolvable:$true] %s406_s6 }
  0x16   : > { %s275_s7 = scalar_select %p274_p11, %s683_s18, 1  ;;  %v307_v6 = vld [vmem:[#allocation2] sm:$0xff] }
  0x17   : > { %s695_s18 = smov [#allocation3]  }
  0x18   : > { %s533_s8 = sshll.u32 %s275_s7, 2  ;;  %549 = vmatpush3.bf16.xpose.msra.mxu0 %v331_v4  ;;  %s534_s13 = sshll.u32 %s275_s7, 3 }
  0x19   : > { %s280_s11 = scalar_lea.vmem %s851_s0, %s533_s8  ;;  %s299_s24 = scalar_lea.vmem %s854_s3, %s534_s13 }
  0x1a   : > { %v308_v5 = vld [vmem:[%s280_s11] sm:$0xf]  ;;  %s613_s11 = scalar_lea.vmem %s805_s6, 128  ;;  %s617_s13 = sshll.u32 %s695_s18, 4  ;;  %s618_s13 = int_to_ptr.vmem [resolvable:$false] %s617_s13 }
  0x1b   : > { %v379_v12 = vld [vmem:[%s299_s24] sm:$0xff]  ;;  %p614_p12 = scmp.ne.s32.totalorder %s805_s6, %s613_s11  ;;  %s619_s14 = scalar_lea.vmem %s618_s13, 256 }
  0x1c   : > { %p620_p1 = scmp.lt.s32.totalorder %s805_s6, %s618_s13  ;;  %p621_p2 = scmp.lt.s32.totalorder %s619_s14, %s613_s11 }
  0x1d   : > { %p615_p13 = pnand %p614_p12, %p761_p4 }
  0x1e   : > { %p622_p3 = por %p621_p2, %p620_p1 }
  0x1f   : > { %551 = vmatmul.mubr.msk.bf16.vlgmr.msra.gmra.mrb[0].mxu0 %vm323_vm0, %v308_v5  ;;  %p616_p0 = pneg %p615_p13 }
  0x21   : > { %p623_p5 = pnand %p622_p3, %p616_p0 }
  0xf2   : > { %v367_v7 = vpop.f32.mrb[0].mxu0 }
  0xf3   : > { %v373_v8 = vadd.f32 %v367_v7, %v307_v6  ;;  %v552_v9 = vpop.f32.mrb[1].mxu0 }
  0xf4   : > { %v370_v10 = vpop.f32.mrb[2].mxu0 }
  0xf5   : > { %375 = vst.msk [vmem:[#allocation2] sm:$0xff] %vm305_vm1, %v373_v8  ;;  %v553_v11 = vpop.f32.mrb[3].mxu0 }
  0xfc   : > { %v380_v13 = vld [vmem:[#allocation2] sm:$0xff] }
  0xfd   : > { %v381_v15 = vadd.f32 %v380_v13, %v379_v12 }
  0xff   : > { %v389_v16 = vadd.f32 %v538_v14, %v381_v15 }
 0x101   : > { %390 = vst.msk [vmem:[%s273_s5] sm:$0xff] %vm305_vm1, %v389_v16 }
 0x102   : > { %626 = shalt.err (!%p623_p5)
}
 0x103   : > { %s627_s12 = scalar_lea.hbm %s803_s9, 128  ;;  %s631_s24 = scalar_lea.hbm %s855_s4, 256 }
 0x104   : > { %p628_p6 = scmp.ne.s32.totalorder %s803_s9, %s627_s12  ;;  %p632_p10 = scmp.lt.u32.totalorder %s803_s9, %s855_s4 }
 0x105   : > { %p633_p11 = scmp.lt.u32.totalorder %s631_s24, %s627_s12  ;;  %p635_p13 = scmp.lt.u32.totalorder %s627_s12, %s803_s9 }
 0x106   : > { %p629_p7 = pnand %p628_p6, %p761_p4 }
 0x107   : > { %p634_p12 = por %p633_p11, %p632_p10 }
 0x108   : > { %p630_p9 = pneg %p629_p7 }
 0x109   : > { %p636_p0 = por %p635_p13, %p634_p12 }
 0x10b   : > { %p637_p1 = pnand %p636_p0, %p630_p9 }
 0x10d   : > { %640 = shalt.err (!%p637_p1)
}
 0x10e   : > { %554 = dma.vmem_to_hbm [thread:$0]  (%p761_p4), %s805_s6, 128, %s803_s9, %s392_s10  }
 0x10f PF: > { %p560_p2 = scmp.ge.s32.totalorder %s691_s20, 2  ;;  %s418_s30 = sand.u32 1, %s671_s15  }
 0x110   : > { %s419_s5 = scalar_lea.sflag [#allocation4], %s418_s30 }
 0x111   : > { %p557_p3 = pnand %p560_p2, %p768_p8 }
 0x113   : > { %666 = dma.done.wait (!%p557_p3), %s419_s5, 128  }
 0x114   : > { %668 = vsyncadd (!%p557_p3), %s419_s5, 4294967168  ;;  %s17_s20 = sadd.s32 1, %s691_s20   ;;  %s858_s15 = smov %s675_s16 }
 0x115   : > { %p14_p5 = scmp.ge.s32.totalorder %s17_s20, 4   ;;  %s859_s16 = smov %s679_s17 }
 0x116   : > { %s860_s17 = smov %s774_s28  ;;  %s861_s18 = smov %s687_s19 }
 0x117   : > { %s862_s19 = smov %s864_s23  ;;  %16 = sbr.rel (!%p14_p5) target bundleno = 4 (0x4), region = 88 }
 0x11e   :  { %424 = vsyncpa [#allocation4], 1 }
 0x11f   :  { %426 = vsyncpa [#allocation4 + $0x1], 1 }

// kernel: decoder_layer_forward.6
= control target key start
LH: loop header
LB: loop body
LE: loop exit
PB: predicated region body
PF: predicated region fallthrough
CT: control target
= control target key end

     0   :  { %s1663_s24 = smov 0   ;;  %s1824_s0 = inlined_call_operand.vmem [shape: bf16[2,4,8,8], index: 0, kind: input, shape index: {}]   ;;  %s1825_s1 = inlined_call_operand.vmem [shape: bf16[2,4,8,8], index: 1, kind: input, shape index: {}]   ;;  %s1826_s2 = inlined_call_operand.vmem [shape: bf16[2,4,8,8], index: 2, kind: input, shape index: {}]   ;;  %s1827_s3 = inlined_call_operand.vmem [shape: bf16[2,4,4,8], index: 3, kind: input, shape index: {}]   ;;  %s1828_s4 = inlined_call_operand.vmem [shape: bf16[2,4,4,8], index: 4, kind: input, shape index: {}]   ;;  %s1829_s5 = inlined_call_operand.vmem [shape: f32[2,1,8,4], index: 5, kind: input, shape index: {}]   ;;  %s1830_s6 = inlined_call_operand.vmem [shape: f32[2,1,8,8], index: 6, kind: input, shape index: {}]   ;;  %s1831_s7 = inlined_call_operand.vmem [shape: bf16[2,4,8,8], index: 7, kind: output, shape index: {}]  }
   0x1 LB: > { %s1392_s25 = sadd.s32 4294967295, %s1619_s24   ;;  %p1396_p0 = scmp.ge.s32.totalorder %s1619_s24, 1  ;;  %s1619_s24 = sphi %s1663_s24, %s17_s24  }
   0x2   : > { %p295_p1 = scmp.lt.s32.totalorder %s1619_s24, 3 }
   0x4   : > { %p296_p2 = pnand %p1396_p0, %p295_p1 }
   0x5   : > { %p355_p3 = scmp.lt.s32.totalorder (!%p296_p2), %s1392_s25, 1  ;;  %v1621_v0 = vmov (!%p296_p2), 0.0   ;;  %vm1622_vm0 = vmmov (!%p296_p2), 0   ;;  %vm416_vm1 = vcmask (!%p296_p2), 64512   ;;  %vm789_vm2 = vcmask (!%p296_p2), 31744  }
   0x6   : > { %299 = sbr.rel (%p296_p2) target bundleno = 665 (0x299), region = 48  ;;  %1467 = vmatprep.subr.bf16.mxu0 (!%p296_p2), %v1621_v0  ;;  %1473 = vmatprep.subr.bf16.mxu1 (!%p296_p2), %v1621_v0  ;;  %vm881_vm3 = vcmask (!%p296_p2), 1043456   ;;  %vm1066_vm4 = vcmask (!%p296_p2), 1041408   ;;  %vm1260_vm5 = vcmask (!%p296_p2), 60416  }
   0x7   : > { %1469 = vmatprep.mubr.msk.bf16.mxu0 (!%p296_p2), %vm1622_vm0, %v1621_v0  ;;  %1475 = vmatprep.mubr.msk.bf16.mxu1 (!%p296_p2), %vm1622_vm0, %v1621_v0 }
   0xd   : > { %s1833_s25 = smov (!%p355_p3, %s1392_s25), 1 }
   0xe   : > { %s1677_s26 = sshll.u32 %s1833_s25, 3  ;;  %s1683_s30 = sshll.u32 %s1833_s25, 4 }
   0xf   : > { %s374_s29 = scalar_lea.vmem %s1827_s3, %s1677_s26  ;;  %s359_s10 = scalar_lea.vmem %s1824_s0, %s1683_s30 }
  0x10   : > { %v406_v1 = vld [vmem:[%s374_s29] sm:$0x3]  ;;  %v407_v2 = vld [vmem:[%s374_s29 + $0x2] sm:$0x3]  ;;  %v408_v5 = vld [vmem:[%s374_s29 + $0x4] sm:$0x3]  ;;  %s364_s13 = scalar_lea.vmem %s1825_s1, %s1683_s30  ;;  %s383_s16 = scalar_lea.vmem %s1829_s5, %s1677_s26 }
  0x11   : > { %v421_v3 = vsel %vm416_vm1, %v406_v1, 0  ;;  %v467_v4 = vsel %vm416_vm1, %v407_v2, 0  ;;  %v409_v6 = vld [vmem:[%s374_s29 + $0x6] sm:$0x3]  ;;  %v394_v7 = vld [vmem:[%s359_s10] sm:$0xf]  ;;  %s387_s19 = scalar_lea.vmem %s1830_s6, %s1677_s26  ;;  %s369_s22 = scalar_lea.vmem %s1826_s2, %s1683_s30 }
  0x12   : > { %1468 = vmatpush3.bf16.xpose.msra.mxu0 %v421_v3  ;;  %1474 = vmatpush3.bf16.xpose.msra.mxu1 %v467_v4  ;;  %v395_v8 = vld [vmem:[%s359_s10 + $0x4] sm:$0xf]  ;;  %v513_v9 = vsel %vm416_vm1, %v408_v5, 0  ;;  %v559_v10 = vsel %vm416_vm1, %v409_v6, 0  ;;  %v398_v11 = vld [vmem:[%s364_s13] sm:$0xf]  ;;  %s1773_s27 = scalar_lea.vmem %s1828_s4, %s1677_s26  ;;  %s392_s29 = scalar_lea.vmem %s1831_s7, %s1683_s30 }
  0x13   : > { %1479 = vmatprep.subr.bf16.mxu0 %v1621_v0  ;;  %1485 = vmatprep.subr.bf16.mxu1 %v1621_v0  ;;  %v399_v12 = vld [vmem:[%s364_s13 + $0x4] sm:$0xf]  ;;  %v396_v13 = vld [vmem:[%s359_s10 + $0x8] sm:$0xf]  ;;  %v397_v14 = vld [vmem:[%s359_s10 + $0xc] sm:$0xf] }
  0x14   : > { %v610_v15 = vsel %vm416_vm1, %v398_v11, 0  ;;  %v653_v16 = vsel %vm416_vm1, %v399_v12, 0  ;;  %v400_v17 = vld [vmem:[%s364_s13 + $0x8] sm:$0xf]  ;;  %v401_v18 = vld [vmem:[%s364_s13 + $0xc] sm:$0xf] }
  0x15   : > { %v696_v19 = vsel %vm416_vm1, %v400_v17, 0  ;;  %v739_v20 = vsel %vm416_vm1, %v401_v18, 0  ;;  %v414_v23 = vld [vmem:[%s383_s16] sm:$0xff] }
  0x16   : > { %v415_v49 = vld [vmem:[%s387_s19] sm:$0xff] }
  0x17   : > { %v403_v18 = vld [vmem:[%s369_s22 + $0x4] sm:$0xf] }
  0x19   : > { %1470 = vmatmul.mubr.msk.bf16.vlgmr.msra.gmra.mrb[0].mxu0 %vm416_vm1, %v394_v7  ;;  %1476 = vmatmul.mubr.msk.bf16.vlgmr.msra.gmra.mrb[0].mxu1 %vm416_vm1, %v395_v8 }
  0x1a   : > { %1480 = vmatpush3.bf16.xpose.msra.mxu0 %v513_v9  ;;  %1486 = vmatpush3.bf16.xpose.msra.mxu1 %v559_v10 }
  0x1b   : > { %1481 = vmatprep.mubr.msk.bf16.mxu0 %vm1622_vm0, %v1621_v0  ;;  %1491 = vmatprep.subr.bf16.mxu0 %v1621_v0 }
  0x1c   : > { %1487 = vmatprep.mubr.msk.bf16.mxu1 %vm1622_vm0, %v1621_v0  ;;  %1497 = vmatprep.subr.bf16.mxu1 %v1621_v0 }
  0x21   : > { %1482 = vmatmul.mubr.msk.bf16.vlgmr.msra.gmra.mrb[4].mxu0 %vm416_vm1, %v396_v13  ;;  %1488 = vmatmul.mubr.msk.bf16.vlgmr.msra.gmra.mrb[4].mxu1 %vm416_vm1, %v397_v14 }
  0x22   : > { %1492 = vmatpush3.bf16.xpose.msra.mxu0 %v610_v15  ;;  %1498 = vmatpush3.bf16.xpose.msra.mxu1 %v653_v16  ;;  %v402_v16 = vld [vmem:[%s369_s22] sm:$0xf] }
  0x23   : > { %1493 = vmatprep.mubr.msk.bf16.mxu0 %vm1622_vm0, %v1621_v0  ;;  %1503 = vmatprep.subr.bf16.mxu0 %v1621_v0  ;;  %v883_v17 = vsel %vm881_vm3, %v402_v16, 0  ;;  %v413_v16 = vld [vmem:[%s1773_s27 + $0x6] sm:$0x3] }
  0x24   : > { %1499 = vmatprep.mubr.msk.bf16.mxu1 %vm1622_vm0, %v1621_v0  ;;  %1509 = vmatprep.subr.bf16.mxu1 %v1621_v0 }
  0x29   : > { %1494 = vmatmul.mubr.msk.bf16.vlgmr.msra.gmra.mrb[8].mxu0 %vm416_vm1, %v394_v7  ;;  %1500 = vmatmul.mubr.msk.bf16.vlgmr.msra.gmra.mrb[8].mxu1 %vm416_vm1, %v395_v8 }
  0x2a   : > { %1504 = vmatpush3.bf16.xpose.msra.mxu0 %v696_v19  ;;  %1510 = vmatpush3.bf16.xpose.msra.mxu1 %v739_v20  ;;  %v929_v19 = vsel %vm881_vm3, %v403_v18, 0  ;;  %v404_v20 = vld [vmem:[%s369_s22 + $0x8] sm:$0xf]  ;;  %v1206_v18 = vsel %vm1066_vm4, %v413_v16, 0 }
  0x2b   : > { %1505 = vmatprep.mubr.msk.bf16.mxu0 %vm1622_vm0, %v1621_v0  ;;  %1511 = vmatprep.mubr.msk.bf16.mxu1 %vm1622_vm0, %v1621_v0 }
  0x2c   : > { %1515 = vmatprep.subr.bf16.mxu0 %v1621_v0  ;;  %1521 = vmatprep.subr.bf16.mxu1 %v1621_v0 }
  0x31   : > { %1506 = vmatmul.mubr.msk.bf16.vlgmr.msra.gmra.mrb[12].mxu0 %vm416_vm1, %v396_v13  ;;  %1512 = vmatmul.mubr.msk.bf16.vlgmr.msra.gmra.mrb[12].mxu1 %vm416_vm1, %v397_v14 }
  0x32   : > { %1517 = vmatprep.mubr.msk.bf16.mxu0 %vm1622_vm0, %v1621_v0  ;;  %1523 = vmatprep.mubr.msk.bf16.mxu1 %vm1622_vm0, %v1621_v0 }
  0x33   : > { %1516 = vmatpush3.bf16.msra.mxu0 %v883_v17  ;;  %1522 = vmatpush3.bf16.msra.mxu1 %v929_v19 }
  0x34   : > { %1527 = vmatprep.subr.bf16.mxu0 %v1621_v0  ;;  %1533 = vmatprep.subr.bf16.mxu1 %v1621_v0 }
  0xec   : > { %v457_v21 = vpop.f32.mrb[0].mxu0  ;;  %v503_v22 = vpop.f32.mrb[0].mxu1 }
  0xed   : > { %v601_v24 = vmul.f32 0.35355338, %v457_v21  ;;  %v1471_v25 = vpop.f32.mrb[1].mxu0  ;;  %v602_v26 = vmul.f32 0.35355338, %v503_v22  ;;  %v1477_v27 = vpop.f32.mrb[1].mxu1 }
  0xee   : > { %v460_v28 = vpop.f32.mrb[2].mxu0  ;;  %v506_v29 = vpop.f32.mrb[2].mxu1  ;;  %v975_v21 = vsel %vm881_vm3, %v404_v20, 0  ;;  %v405_v22 = vld [vmem:[%s369_s22 + $0xc] sm:$0xf] }
  0xef   : > { %v1472_v30 = vpop.f32.mrb[3].mxu0  ;;  %v1478_v31 = vpop.f32.mrb[3].mxu1  ;;  %v1737_v32 = vadd.f32 %v601_v24, %v414_v23  ;;  %v1739_v33 = vadd.f32 %v602_v26, %v414_v23 }
  0xf1   : > { %v790_v34 = vsel %vm789_vm2, %v1737_v32, -inf  ;;  %v793_v35 = vsel %vm789_vm2, %v1739_v33, -inf }
  0xf2   : > { %791 = vmax.xlane.f32.xlu0 %v790_v34 }
  0xf4   : > { %v549_v36 = vpop.f32.mrb[4].mxu0  ;;  %v595_v37 = vpop.f32.mrb[4].mxu1 }
  0xf5   : > { %v603_v38 = vmul.f32 0.35355338, %v549_v36  ;;  %v1483_v39 = vpop.f32.mrb[5].mxu0  ;;  %v1489_v40 = vpop.f32.mrb[5].mxu1  ;;  %v604_v60 = vmul.f32 0.35355338, %v595_v37 }
  0xf6   : > { %v552_v41 = vpop.f32.mrb[6].mxu0  ;;  %794 = vmax.xlane.f32.xlu0 %v793_v35  ;;  %v598_v42 = vpop.f32.mrb[6].mxu1 }
  0xf7   : > { %v1484_v43 = vpop.f32.mrb[7].mxu0  ;;  %v1490_v44 = vpop.f32.mrb[7].mxu1  ;;  %v1745_v45 = vadd.f32 %v603_v38, %v414_v23  ;;  %v608_v6 = vadd.f32 %v604_v60, %v414_v23  ;;  %v1021_v23 = vsel %vm881_vm3, %v405_v22, 0 }
  0xf9   : > { %v796_v46 = vsel %vm789_vm2, %v1745_v45, -inf  ;;  %v799_v13 = vsel %vm789_vm2, %v608_v6, -inf }
  0xfa   : > { %797 = vmax.xlane.f32.xlu0 %v796_v46 }
  0xfc   : > { %v646_v47 = vpop.f32.mrb[8].mxu0  ;;  %v689_v48 = vpop.f32.mrb[8].mxu1 }
  0xfd   : > { %v781_v50 = vmul.f32 0.35355338, %v646_v47  ;;  %v1495_v51 = vpop.f32.mrb[9].mxu0  ;;  %v782_v52 = vmul.f32 0.35355338, %v689_v48  ;;  %v1501_v53 = vpop.f32.mrb[9].mxu1 }
  0xfe   : > { %v649_v54 = vpop.f32.mrb[10].mxu0  ;;  %v692_v55 = vpop.f32.mrb[10].mxu1 }
  0xff   : > { %v1496_v56 = vpop.f32.mrb[11].mxu0  ;;  %v1502_v57 = vpop.f32.mrb[11].mxu1  ;;  %v785_v58 = vadd.f32 %v781_v50, %v415_v49  ;;  %v786_v59 = vadd.f32 %v782_v52, %v415_v49 }
 0x101   : > { %v802_v61 = vsel %vm416_vm1, %v785_v58, -inf  ;;  %v805_v62 = vsel %vm416_vm1, %v786_v59, -inf }
 0x102   : > { %803 = vmax.xlane.f32.xlu1 %v802_v61  ;;  %v410_v61 = vld [vmem:[%s1773_s27] sm:$0x3] }
 0x104   : > { %v732_v63 = vpop.f32.mrb[12].mxu0  ;;  %v775_v1 = vpop.f32.mrb[12].mxu1 }
 0x105   : > { %v783_v2 = vmul.f32 0.35355338, %v732_v63  ;;  %v784_v3 = vmul.f32 0.35355338, %v775_v1  ;;  %v1507_v4 = vpop.f32.mrb[13].mxu0  ;;  %v1513_v5 = vpop.f32.mrb[13].mxu1 }
 0x106   : > { %806 = vmax.xlane.f32.xlu1 %v805_v62  ;;  %v735_v7 = vpop.f32.mrb[14].mxu0  ;;  %v778_v8 = vpop.f32.mrb[14].mxu1  ;;  %v1068_v4 = vsel %vm1066_vm4, %v410_v61, 0  ;;  %v411_v5 = vld [vmem:[%s1773_s27 + $0x2] sm:$0x3] }
 0x107   : > { %v1508_v9 = vpop.f32.mrb[15].mxu0  ;;  %v1514_v10 = vpop.f32.mrb[15].mxu1  ;;  %v787_v11 = vadd.f32 %v783_v2, %v415_v49  ;;  %v788_v12 = vadd.f32 %v784_v3, %v415_v49 }
 0x109   : > { %v808_v14 = vsel %vm416_vm1, %v787_v11, -inf  ;;  %v811_v15 = vsel %vm416_vm1, %v788_v12, -inf }
 0x10a   : > { %800 = vmax.xlane.f32.xlu1 %v799_v13  ;;  %809 = vmax.xlane.f32.xlu0 %v808_v14 }
 0x10e   : > { %812 = vmax.xlane.f32.xlu1 %v811_v15 }
 0x17f   : > { %v792_v24 = vpop.xlane.xlu0 %791 }
 0x183   : > { %v795_v25 = vpop.xlane.xlu0 %794 }
 0x187   : > { %v798_v30 = vpop.xlane.xlu0 %797 }
 0x18f   : > { %v804_v26 = vpop.xlane.xlu1 %803 }
 0x190   : > { %v814_v27 = vmax.f32 %v792_v24, %v804_v26 }
 0x192   : > { %v818_v28 = vsub.f32 %v1737_v32, %v814_v27  ;;  %v830_v29 = vsub.f32 %v785_v58, %v814_v27 }
 0x193   : > { %v807_v31 = vpop.xlane.xlu1 %806 }
 0x194   : > { %v822_v34 = vmul.f32 1.442695, %v818_v28  ;;  %v834_v35 = vmul.f32 1.442695, %v830_v29  ;;  %v815_v36 = vmax.f32 %v795_v25, %v807_v31 }
 0x196   : > { %1589 = vpow2.f32 %v822_v34  ;;  %v819_v37 = vsub.f32 %v1739_v33, %v815_v36  ;;  %v831_v38 = vsub.f32 %v786_v59, %v815_v36 }
 0x197   : > { %1591 = vpow2.f32 %v834_v35  ;;  %v801_v39 = vpop.xlane.xlu1 %800  ;;  %v810_v40 = vpop.xlane.xlu0 %809 }
 0x198   : > { %v824_v41 = vmul.f32 1.442695, %v819_v37  ;;  %v836_v42 = vmul.f32 1.442695, %v831_v38  ;;  %v816_v43 = vmax.f32 %v798_v30, %v810_v40 }
 0x19a   : > { %1593 = vpow2.f32 %v824_v41  ;;  %v820_v44 = vsub.f32 %v1745_v45, %v816_v43  ;;  %v832_v32 = vsub.f32 %v787_v11, %v816_v43  ;;  %v1114_v11 = vsel %vm1066_vm4, %v411_v5, 0 }
 0x19b   : > { %1595 = vpow2.f32 %v836_v42  ;;  %v813_v46 = vpop.xlane.xlu1 %812 }
 0x19c   : > { %v826_v47 = vmul.f32 1.442695, %v820_v44  ;;  %v838_v48 = vmul.f32 1.442695, %v832_v32  ;;  %v817_v49 = vmax.f32 %v801_v39, %v813_v46 }
 0x19e   : > { %1597 = vpow2.f32 %v826_v47  ;;  %v821_v50 = vsub.f32 %v608_v6, %v817_v49  ;;  %v833_v33 = vsub.f32 %v788_v12, %v817_v49  ;;  %v412_v12 = vld [vmem:[%s1773_s27 + $0x4] sm:$0x3] }
 0x19f   : > { %1599 = vpow2.f32 %v838_v48  ;;  %v1160_v15 = vsel %vm1066_vm4, %v412_v12, 0 }
 0x1a0   : > { %v1590_v51 = vpop.eup %1589  ;;  %v828_v52 = vmul.f32 1.442695, %v821_v50  ;;  %v840_v53 = vmul.f32 1.442695, %v833_v33 }
 0x1a1   : > { %v1592_v54 = vpop.eup %1591  ;;  %v842_v55 = vsel %vm789_vm2, %v1590_v51, 0.0  ;;  %v870_v14 = vpack.c.bf16 %v1590_v51, %v1590_v51 }
 0x1a2   : > { %1601 = vpow2.f32 %v828_v52  ;;  %843 = vadd.xlane.f32.xlu0 %v842_v55  ;;  %v874_v45 = vpack.c.bf16 %v1592_v54, %v1592_v54  ;;  %v854_v59 = vsel %vm416_vm1, %v1592_v54, 0.0 }
 0x1a3   : > { %1603 = vpow2.f32 %v840_v53 }
 0x1a4   : > { %v1594_v56 = vpop.eup %1593  ;;  %1518 = vmatmul.mubr.msk.bf16.vlgmr.msra.gmra.mrb[16].mxu0 %vm416_vm1, %v874_v45 }
 0x1a5   : > { %v1596_v57 = vpop.eup %1595  ;;  %v845_v58 = vsel %vm789_vm2, %v1594_v56, 0.0  ;;  %1528 = vmatpush3.bf16.msra.mxu0 %v975_v21  ;;  %1529 = vmatprep.mubr.msk.bf16.mxu0 %vm1622_vm0, %v1621_v0  ;;  %v871_v17 = vpack.c.bf16 %v1594_v56, %v1594_v56 }
 0x1a6   : > { %846 = vadd.xlane.f32.xlu1 %v845_v58  ;;  %855 = vadd.xlane.f32.xlu0 %v854_v59  ;;  %v875_v60 = vpack.c.bf16 %v1596_v57, %v1596_v57  ;;  %v857_v1 = vsel %vm416_vm1, %v1596_v57, 0.0 }
 0x1a7   : > { %1539 = vmatprep.subr.bf16.mxu0 %v1621_v0 }
 0x1a8   : > { %v1598_v62 = vpop.eup %1597  ;;  %1524 = vmatmul.mubr.msk.bf16.vlgmr.msra.gmra.mrb[16].mxu1 %vm416_vm1, %v875_v60 }
 0x1a9   : > { %v1600_v63 = vpop.eup %1599  ;;  %1534 = vmatpush3.bf16.msra.mxu1 %v1021_v23  ;;  %v848_v2 = vsel %vm789_vm2, %v1598_v62, 0.0  ;;  %1535 = vmatprep.mubr.msk.bf16.mxu1 %vm1622_vm0, %v1621_v0  ;;  %v872_v19 = vpack.c.bf16 %v1598_v62, %v1598_v62 }
 0x1aa   : > { %858 = vadd.xlane.f32.xlu1 %v857_v1  ;;  %849 = vadd.xlane.f32.xlu0 %v848_v2  ;;  %v876_v3 = vpack.c.bf16 %v1600_v63, %v1600_v63  ;;  %v860_v9 = vsel %vm416_vm1, %v1600_v63, 0.0 }
 0x1ab   : > { %1545 = vmatprep.subr.bf16.mxu1 %v1621_v0 }
 0x1ac   : > { %v1602_v6 = vpop.eup %1601  ;;  %1530 = vmatmul.mubr.msk.bf16.vlgmr.msra.gmra.mrb[20].mxu0 %vm416_vm1, %v876_v3 }
 0x1ad   : > { %v1604_v7 = vpop.eup %1603  ;;  %v851_v8 = vsel %vm789_vm2, %v1602_v6, 0.0  ;;  %1540 = vmatpush3.bf16.msra.mxu0 %v1068_v4  ;;  %1541 = vmatprep.mubr.msk.bf16.mxu0 %vm1622_vm0, %v1621_v0  ;;  %v873_v20 = vpack.c.bf16 %v1602_v6, %v1602_v6 }
 0x1ae   : > { %852 = vadd.xlane.f32.xlu1 %v851_v8  ;;  %861 = vadd.xlane.f32.xlu0 %v860_v9  ;;  %v877_v10 = vpack.c.bf16 %v1604_v7, %v1604_v7  ;;  %v863_v13 = vsel %vm416_vm1, %v1604_v7, 0.0 }
 0x1af   : > { %1551 = vmatprep.subr.bf16.mxu0 %v1621_v0 }
 0x1b0   : > { %1536 = vmatmul.mubr.msk.bf16.vlgmr.msra.gmra.mrb[20].mxu1 %vm416_vm1, %v877_v10 }
 0x1b1   : > { %1546 = vmatpush3.bf16.msra.mxu1 %v1114_v11  ;;  %1547 = vmatprep.mubr.msk.bf16.mxu1 %vm1622_vm0, %v1621_v0 }
 0x1b2   : > { %864 = vadd.xlane.f32.xlu1 %v863_v13  ;;  %1557 = vmatprep.subr.bf16.mxu1 %v1621_v0 }
 0x1b4   : > { %1542 = vmatmul.mubr.msk.bf16.vlgmr.msra.gmra.mrb[16].mxu0 %vm789_vm2, %v870_v14 }
 0x1b5   : > { %1552 = vmatpush3.bf16.msra.mxu0 %v1160_v15  ;;  %1553 = vmatprep.mubr.msk.bf16.mxu0 %vm1622_vm0, %v1621_v0 }
 0x1b8   : > { %1548 = vmatmul.mubr.msk.bf16.vlgmr.msra.gmra.mrb[16].mxu1 %vm789_vm2, %v871_v17 }
 0x1b9   : > { %1558 = vmatpush3.bf16.msra.mxu1 %v1206_v18  ;;  %1559 = vmatprep.mubr.msk.bf16.mxu1 %vm1622_vm0, %v1621_v0 }
 0x1bc   : > { %1554 = vmatmul.mubr.msk.bf16.vlgmr.msra.gmra.mrb[20].mxu0 %vm789_vm2, %v872_v19 }
 0x1c0   : > { %1560 = vmatmul.mubr.msk.bf16.vlgmr.msra.gmra.mrb[20].mxu1 %vm789_vm2, %v873_v20 }
 0x22f   : > { %v844_v21 = vpop.xlane.xlu0 %843 }
 0x233   : > { %v847_v22 = vpop.xlane.xlu1 %846  ;;  %v856_v23 = vpop.xlane.xlu0 %855 }
 0x234   : > { %v866_v26 = vadd.f32 %v856_v23, %v844_v21 }
 0x236   : > { %1605 = vrcp.f32 %v866_v26 }
 0x237   : > { %v859_v24 = vpop.xlane.xlu1 %858  ;;  %v850_v25 = vpop.xlane.xlu0 %849 }
 0x238   : > { %v867_v28 = vadd.f32 %v859_v24, %v847_v22 }
 0x23a   : > { %1607 = vrcp.f32 %v867_v28 }
 0x23b   : > { %v853_v27 = vpop.xlane.xlu1 %852  ;;  %v862_v29 = vpop.xlane.xlu0 %861 }
 0x23c   : > { %v868_v30 = vadd.f32 %v862_v29, %v850_v25 }
 0x23e   : > { %1609 = vrcp.f32 %v868_v30 }
 0x23f   : > { %v865_v0 = vpop.xlane.xlu1 %864 }
 0x240   : > { %v869_v31 = vadd.f32 %v865_v0, %v853_v27  ;;  %v1606_v34 = vpop.eup %1605 }
 0x242   : > { %1611 = vrcp.f32 %v869_v31 }
 0x244   : > { %v1608_v41 = vpop.eup %1607 }
 0x248   : > { %v1610_v48 = vpop.eup %1609 }
 0x24c   : > { %v1612_v54 = vpop.eup %1611 }
 0x287   : > { %v1104_v35 = vpop.f32.mrb[16].mxu0 }
 0x288   : > { %v1252_v36 = vmul.f32 %v1606_v34, %v1104_v35  ;;  %v1543_v37 = vpop.f32.mrb[17].mxu0 }
 0x289   : > { %v1107_v38 = vpop.f32.mrb[18].mxu0 }
 0x28a   : > { %v1256_v39 = vpack.c.bf16 %v1252_v36, %v1252_v36  ;;  %v1544_v40 = vpop.f32.mrb[19].mxu0 }
 0x28b   : > { %v1150_v42 = vpop.f32.mrb[16].mxu1 }
 0x28c   : > { %1261 = vst.msk [vmem:[%s392_s29] sm:$0xf] %vm1260_vm5, %v1256_v39  ;;  %v1253_v43 = vmul.f32 %v1608_v41, %v1150_v42  ;;  %v1549_v44 = vpop.f32.mrb[17].mxu1 }
 0x28d   : > { %v1153_v32 = vpop.f32.mrb[18].mxu1 }
 0x28e   : > { %v1257_v46 = vpack.c.bf16 %v1253_v43, %v1253_v43  ;;  %v1550_v47 = vpop.f32.mrb[19].mxu1 }
 0x28f   : > { %v1196_v49 = vpop.f32.mrb[20].mxu0 }
 0x290   : > { %1262 = vst.msk [vmem:[%s392_s29 + $0x4] sm:$0xf] %vm1260_vm5, %v1257_v46  ;;  %v1254_v50 = vmul.f32 %v1610_v48, %v1196_v49  ;;  %v1555_v33 = vpop.f32.mrb[21].mxu0 }
 0x291   : > { %v1199_v51 = vpop.f32.mrb[22].mxu0 }
 0x292   : > { %v1258_v52 = vpack.c.bf16 %v1254_v50, %v1254_v50  ;;  %v1556_v53 = vpop.f32.mrb[23].mxu0 }
 0x293   : > { %v1242_v55 = vpop.f32.mrb[20].mxu1 }
 0x294   : > { %1263 = vst.msk [vmem:[%s392_s29 + $0x8] sm:$0xf] %vm1260_vm5, %v1258_v52  ;;  %v1255_v45 = vmul.f32 %v1612_v54, %v1242_v55  ;;  %v1561_v56 = vpop.f32.mrb[21].mxu1 }
 0x295   : > { %v1245_v57 = vpop.f32.mrb[22].mxu1 }
 0x296   : > { %v1259_v58 = vpack.c.bf16 %v1255_v45, %v1255_v45  ;;  %v1562_v59 = vpop.f32.mrb[23].mxu1 }
 0x298   : > { %1264 = vst.msk [vmem:[%s392_s29 + $0xc] sm:$0xf] %vm1260_vm5, %v1259_v58 }
 0x299 PF: > { %s17_s24 = sadd.s32 1, %s1619_s24  }
 0x29a   : > { %p14_p4 = scmp.ge.s32.totalorder %s17_s24, 4  }
 0x29c   :  { %16 = sbr.rel (!%p14_p4) target bundleno = 1 (0x1), region = 96 }

// kernel: decoder_layer_forward.8
= control target key start
LH: loop header
LB: loop body
LE: loop exit
PB: predicated region body
PF: predicated region fallthrough
CT: control target
= control target key end

     0   :  { %s846_s21 = smov 0   ;;  %s848_s22 = smov 0   ;;  %s927_s0 = inlined_call_operand.vmem [shape: f32[16,32], index: 0, kind: input, shape index: {}]   ;;  %s928_s1 = inlined_call_operand.vmem [shape: f32[1,32], index: 1, kind: input, shape index: {}]   ;;  %s929_s2 = inlined_call_operand.vmem [shape: bf16[64,32], index: 2, kind: input, shape index: {}]   ;;  %s930_s3 = inlined_call_operand.vmem [shape: f32[1,64], index: 3, kind: input, shape index: {}]   ;;  %s931_s4 = inlined_call_operand.vmem [shape: bf16[64,32], index: 4, kind: input, shape index: {}]   ;;  %s932_s5 = inlined_call_operand.vmem [shape: f32[1,64], index: 5, kind: input, shape index: {}]   ;;  %s933_s6 = inlined_call_operand.vmem [shape: bf16[16,64], index: 6, kind: output, shape index: {}]  }
   0x1   :  { %s850_s23 = smov 0  }
   0x2 LB: > { %s28_s24 = sadd.s32 1, %s803_s22  ;;  %p691_p0 = scmp.ge.s32.totalorder %s807_s23, 1  ;;  %s807_s23 = sphi %s850_s23, %s16_s23   ;;  %s803_s22 = sphi %s848_s22, %s935_s22   ;;  %s799_s21 = sphi %s846_s21, %s934_s21  }
   0x3   : > { %p30_p1 = scmp.ge.s32.totalorder %s28_s24, 2  ;;  %p263_p2 = scmp.lt.s32.totalorder %s807_s23, 3 }
   0x5   : > { %s937_s24 = smov (%p30_p1, %s28_s24), 0  ;;  %p264_p3 = pnand %p691_p0, %p263_p2 }
   0x6   : > { %p310_p4 = scmp.lt.s32.totalorder (!%p264_p3), %s799_s21, 1  ;;  %vm342_vm0 = vcmask (!%p264_p3), 261120   ;;  %v769_v0 = vld [vmem:[%s929_s2] sm:$0xff] (!%p264_p3)   ;;  %v809_v1 = vmov (!%p264_p3), 0.0   ;;  %v771_v5 = vld [vmem:[%s929_s2 + $0x8] sm:$0xff] (!%p264_p3)   ;;  %v773_v12 = vld [vmem:[%s929_s2 + $0x10] sm:$0xff] (!%p264_p3)   ;;  %v354_v22 = vlaneseq (!%p264_p3) }
   0x7   : > { %267 = sbr.rel (%p264_p3) target bundleno = 429 (0x1ad), region = 44  ;;  %719 = vmatprep.subr.bf16.mxu0 (!%p264_p3), %v809_v1  ;;  %731 = vmatprep.subr.bf16.mxu1 (!%p264_p3), %v809_v1  ;;  %v400_v2 = vsel (!%p264_p3), %vm342_vm0, %v769_v0, 0  ;;  %v770_v3 = vld [vmem:[%s931_s4] sm:$0xff] (!%p264_p3)   ;;  %v772_v6 = vld [vmem:[%s931_s4 + $0x8] sm:$0xff] (!%p264_p3)   ;;  %v403_v9 = vsel (!%p264_p3), %vm342_vm0, %v771_v5, 0  ;;  %v774_v13 = vld [vmem:[%s931_s4 + $0x10] sm:$0xff] (!%p264_p3)  }
   0x8   : > { %720 = vmatpush3.bf16.xpose.msra.mxu0 (!%p264_p3), %v400_v2  ;;  %v487_v4 = vsel (!%p264_p3), %vm342_vm0, %v770_v3, 0  ;;  %v490_v11 = vsel (!%p264_p3), %vm342_vm0, %v772_v6, 0  ;;  %v406_v14 = vsel (!%p264_p3), %vm342_vm0, %v773_v12, 0  ;;  %v493_v15 = vsel (!%p264_p3), %vm342_vm0, %v774_v13, 0  ;;  %v775_v16 = vld [vmem:[%s929_s2 + $0x18] sm:$0xff] (!%p264_p3)  }
   0x9   : > { %721 = vmatprep.subr.bf16.mxu0 (!%p264_p3), %v809_v1  ;;  %732 = vmatpush3.bf16.xpose.msra.mxu1 (!%p264_p3), %v487_v4  ;;  %vm810_vm1 = vmmov (!%p264_p3), 0   ;;  %v776_v17 = vld [vmem:[%s931_s4 + $0x18] sm:$0xff] (!%p264_p3)   ;;  %v409_v18 = vsel (!%p264_p3), %vm342_vm0, %v775_v16, 0  ;;  %v355_v24 = vshrl.u32 (!%p264_p3), %v354_v22, 7  ;;  %v351_v25 = vld [vmem:[%s928_s1] sm:$0x1] (!%p264_p3) }
   0xa   : > { %733 = vmatprep.subr.bf16.mxu1 (!%p264_p3), %v809_v1  ;;  %727 = vmatprep.mubr.msk.bf16.mxu0 (!%p264_p3), %vm810_vm1, %v809_v1  ;;  %v496_v19 = vsel (!%p264_p3), %vm342_vm0, %v776_v17, 0  ;;  %v352_v26 = vadd.f32 (!%p264_p3), 1.0, %v351_v25  ;;  %v694_v33 = vld [vmem:[%s930_s3] ss:$0 sm:$0xff] (!%p264_p3)  ;;  %vm555_vm2 = vcmask (!%p264_p3), 519168  }
   0xb   : > { %739 = vmatprep.mubr.msk.bf16.mxu1 (!%p264_p3), %vm810_vm1, %v809_v1  ;;  %v356_v27 = vsub.s32 (!%p264_p3), 0, %v355_v24  ;;  %v700_v34 = vld [vmem:[%s932_s5] ss:$0 sm:$0xff] (!%p264_p3) }
   0xd   : > { %v357_v28 = vrot.slane (!%p264_p3), %v352_v26, %v356_v27 }
   0xe   : > { %s939_s21 = smov (!%p310_p4, %s799_s21), 1 }
   0xf   : > { %s692_s29 = sshll.u32 %s939_s21, 3  ;;  %s693_s7 = sshll.u32 %s939_s21, 2 }
  0x10   : > { %s313_s12 = scalar_lea.vmem %s927_s0, %s692_s29  ;;  %722 = vmatpush3.bf16.xpose.msra.mxu0 %v403_v9  ;;  %s338_s10 = scalar_lea.vmem %s933_s6, %s693_s7 }
  0x11   : > { %v340_v7 = vld [vmem:[%s313_s12] sm:$0xff]  ;;  %723 = vmatprep.subr.bf16.mxu0 %v809_v1  ;;  %734 = vmatpush3.bf16.xpose.msra.mxu1 %v490_v11 }
  0x12   : > { %v341_v8 = vmul.f32 %v340_v7, %v340_v7  ;;  %735 = vmatprep.subr.bf16.mxu1 %v809_v1 }
  0x14   : > { %v343_v10 = vsel %vm342_vm0, %v341_v8, 0.0 }
  0x15   : > { %344 = vadd.xlane.f32.xlu0 %v343_v10 }
  0x18   : > { %724 = vmatpush3.bf16.xpose.msra.mxu0 %v406_v14 }
  0x19   : > { %736 = vmatpush3.bf16.xpose.msra.mxu1 %v493_v15  ;;  %725 = vmatprep.subr.bf16.mxu0 %v809_v1 }
  0x1a   : > { %737 = vmatprep.subr.bf16.mxu1 %v809_v1 }
  0x20   : > { %726 = vmatpush3.bf16.xpose.msra.mxu0 %v409_v18 }
  0x21   : > { %738 = vmatpush3.bf16.xpose.msra.mxu1 %v496_v19 }
  0xa2   : > { %v345_v20 = vpop.xlane.xlu0 %344 }
  0xa3   : > { %v347_v21 = vmul.f32 0.03125, %v345_v20 }
  0xa5   : > { %v348_v23 = vadd.f32 1e-06, %v347_v21 }
  0xa7   : > { %777 = vrsqrt.f32 %v348_v23 }
  0xb1   : > { %v778_v29 = vpop.eup %777 }
  0xb2   : > { %v350_v30 = vmul.f32 %v778_v29, %v340_v7 }
  0xb4   : > { %v359_v31 = vmul.f32 %v357_v28, %v350_v30 }
  0xb6   : > { %v360_v32 = vpack.c.bf16 %v359_v31, %v359_v31 }
  0xb8   : > { %728 = vmatmul.mubr.msk.bf16.vlgmr.msra.gmra.mrb[0].mxu0 %vm342_vm0, %v360_v32  ;;  %740 = vmatmul.mubr.msk.bf16.vlgmr.msra.gmra.mrb[0].mxu1 %vm342_vm0, %v360_v32 }
 0x18b   : > { %v445_v35 = vpop.f32.mrb[0].mxu0  ;;  %v532_v36 = vpop.f32.mrb[0].mxu1 }
 0x18c   : > { %v446_v37 = vadd.f32 %v694_v33, %v445_v35  ;;  %v533_v38 = vadd.f32 %v700_v34, %v532_v36  ;;  %v729_v39 = vpop.f32.mrb[1].mxu0  ;;  %v741_v40 = vpop.f32.mrb[1].mxu1 }
 0x18d   : > { %v448_v41 = vpop.f32.mrb[2].mxu0  ;;  %v535_v42 = vpop.f32.mrb[2].mxu1 }
 0x18e   : > { %v706_v43 = vmul.f32 -1.442695, %v446_v37  ;;  %v545_v44 = vmul.f32 0.044715, %v533_v38  ;;  %v730_v45 = vpop.f32.mrb[3].mxu0  ;;  %v742_v46 = vpop.f32.mrb[3].mxu1 }
 0x18f   : > { %v544_v54 = vmul.f32 0.5, %v533_v38 }
 0x190   : > { %779 = vpow2.f32 %v706_v43  ;;  %v546_v47 = vmul.f32 %v545_v44, %v533_v38 }
 0x192   : > { %v547_v48 = vmul.f32 %v546_v47, %v533_v38 }
 0x194   : > { %v548_v49 = vadd.f32 %v547_v48, %v533_v38 }
 0x196   : > { %v549_v50 = vmul.f32 0.7978846, %v548_v49 }
 0x198   : > { %781 = vtanh.f32 %v549_v50 }
 0x19a   : > { %v780_v51 = vpop.eup %779 }
 0x19b   : > { %v541_v52 = vadd.f32 1.0, %v780_v51 }
 0x19d   : > { %783 = vrcp.f32 %v541_v52 }
 0x1a2   : > { %v782_v53 = vpop.eup %781 }
 0x1a3   : > { %v551_v55 = vadd.f32 1.0, %v782_v53 }
 0x1a5   : > { %v552_v56 = vmul.f32 %v551_v55, %v544_v54 }
 0x1a7   : > { %v784_v57 = vpop.eup %783 }
 0x1a8   : > { %v553_v58 = vmul.f32 %v784_v57, %v552_v56 }
 0x1aa   : > { %v554_v59 = vpack.c.bf16 %v553_v58, %v553_v58 }
 0x1ac   : > { %556 = vst.msk [vmem:[%s338_s10] sm:$0xf] %vm555_vm2, %v554_v59 }
 0x1ad PF: > { %s16_s23 = sadd.s32 1, %s807_s23   ;;  %s934_s21 = smov %s803_s22 }
 0x1ae   : > { %p13_p5 = scmp.ge.s32.totalorder %s16_s23, 4   ;;  %s935_s22 = smov %s937_s24 }
 0x1b0   :  { %15 = sbr.rel (!%p13_p5) target bundleno = 2 (0x2), region = 86 }

</bundles_post_ra>
